<compile_context>
chip_gen: v5e
topology: v5e:2x2
jax: 0.10.0
libtpu: 0.0.40
codegen_flags: <defaults>
</compile_context>

<pallas_src>
import jax
import jax.numpy as jnp
from jax.experimental import pallas as pl
from jax.experimental.pallas import tpu as pltpu

EPS = 1e-5
FUSED_MAX_NODES = 1024   # padded-node threshold for the single-kernel fused path


def _round_up(x, m):
    return ((x + m - 1) // m) * m


def _pad2(x, shape):
    return jnp.pad(x, [(0, s - d) for d, s in zip(x.shape, shape)])


def _vmem_limit():
    """Scoped-VMEM budget: ~3/4 of physical (capped), safe fallback of 32 MiB."""
    try:
        phys = pltpu.get_tpu_info().vmem_capacity_bytes
        return int(min(phys * 3 // 4, 100 << 20))
    except Exception:
        return 32 << 20


def _pick_row_tile(n_pad):
    """Largest 128-multiple tile <= 512 dividing n_pad, leaving >=2 row tiles
    (keeps both TensorCores busy on v7x via the 'parallel' grid axis)."""
    for tm in (512, 384, 256, 128):
        if n_pad % tm == 0 and (n_pad // tm >= 2 or n_pad == 128):
            return tm
    return 128


# ----------------------------- Pallas kernels ------------------------------

def gcn2_fused_kernel(a_ref, x_ref, w1_ref, b1_ref, w2_ref, b2_ref,
                      p_ref, wc_ref, bc_ref, o_ref):
    """Whole forward in one kernel (small-graph path, everything VMEM-resident)."""
    a = a_ref[...]                                                  # (n, n) bf16
    # layer 1: conv1 -> (folded BN) -> ReLU    (dropout = identity in eval)
    xw1 = jnp.dot(x_ref[...], w1_ref[...], preferred_element_type=jnp.float32)
    h1 = jnp.maximum(
        jnp.dot(a, xw1.astype(jnp.bfloat16), preferred_element_type=jnp.float32)
        + b1_ref[...], 0.0)
    # layer 2
    xw2 = jnp.dot(h1.astype(jnp.bfloat16), w2_ref[...],
                  preferred_element_type=jnp.float32)
    h2 = jnp.maximum(
        jnp.dot(a, xw2.astype(jnp.bfloat16), preferred_element_type=jnp.float32)
        + b2_ref[...], 0.0)
    # global mean pool -> classifier -> sigmoid  (tiny, f32 for accuracy)
    pooled = jnp.dot(p_ref[...], h2, preferred_element_type=jnp.float32)
    logits = jnp.dot(pooled, wc_ref[...],
                     preferred_element_type=jnp.float32) + bc_ref[...]
    o_ref[...] = jax.nn.sigmoid(logits)


def project_kernel(x_ref, w_ref, o_ref):
    """Row tile of XW' = X @ W' (BN scale / bias folded into W').  bf16 in/out."""
    o_ref[...] = jnp.dot(x_ref[...], w_ref[...],
                         preferred_element_type=jnp.float32).astype(o_ref.dtype)


def aggregate_kernel(a_ref, xw_ref, b_ref, o_ref):
    """ReLU(A_row_tile @ XW + b') with XW fully resident in VMEM.
    No reduction grid axis -> no scratch accumulator; bf16 writeback."""
    o_ref[...] = jnp.maximum(
        jnp.dot(a_ref[...], xw_ref[...], preferred_element_type=jnp.float32)
        + b_ref[...], 0.0).astype(o_ref.dtype)


def pool_classify_kernel(p_ref, h_ref, wc_ref, bc_ref, o_ref, acc_ref):
    """Global mean pool tiled over node strips; classifier+sigmoid in finalize."""
    k = pl.program_id(0)

    @pl.when(k == 0)
    def _():
        acc_ref[...] = jnp.zeros_like(acc_ref)

    acc_ref[...] += jnp.dot(p_ref[...], h_ref[...].astype(jnp.float32),
                            preferred_element_type=jnp.float32)

    @pl.when(k == pl.num_programs(0) - 1)
    def _():
        logits = jnp.dot(acc_ref[...], wc_ref[...],
                         preferred_element_type=jnp.float32) + bc_ref[...]
        o_ref[...] = jax.nn.sigmoid(logits)


# ------------------------------ kernel wrappers -----------------------------

def gcn2_fused(a, x, w1, b1, w2, b2, p, wc, bc):
    g = p.shape[0]
    c = wc.shape[1]
    vmem = pl.BlockSpec(memory_space=pltpu.MemorySpace.VMEM)
    return pl.pallas_call(
        gcn2_fused_kernel,
        out_shape=jax.ShapeDtypeStruct((g, c), jnp.float32),
        in_specs=[vmem] * 9,
        out_specs=vmem,
        compiler_params=pltpu.CompilerParams(vmem_limit_bytes=_vmem_limit()),
    )(a, x, w1, b1, w2, b2, p, wc, bc)


def project(x, w, *, tm):
    n, f = x.shape
    h = w.shape[1]
    return pl.pallas_call(
        project_kernel,
        out_shape=jax.ShapeDtypeStruct((n, h), jnp.bfloat16),
        grid_spec=pltpu.PrefetchScalarGridSpec(
            num_scalar_prefetch=0,
            grid=(n // tm,),
            in_specs=[pl.BlockSpec((tm, f), lambda i: (i, 0)),
                      pl.BlockSpec((f, h), lambda i: (0, 0))],
            out_specs=pl.BlockSpec((tm, h), lambda i: (i, 0))),
        compiler_params=pltpu.CompilerParams(
            dimension_semantics=("parallel",),
            vmem_limit_bytes=_vmem_limit()),
    )(x, w)


def aggregate(a, xw, b, *, tm):
    n = a.shape[0]
    h = xw.shape[1]
    return pl.pallas_call(
        aggregate_kernel,
        out_shape=jax.ShapeDtypeStruct((n, h), jnp.bfloat16),
        grid_spec=pltpu.PrefetchScalarGridSpec(
            num_scalar_prefetch=0,
            grid=(n // tm,),
            in_specs=[pl.BlockSpec((tm, n), lambda i: (i, 0)),   # A row tile (bf16)
                      pl.BlockSpec((n, h), lambda i: (0, 0)),    # XW resident (bf16)
                      pl.BlockSpec((1, h), lambda i: (0, 0))],   # folded bias (f32)
            out_specs=pl.BlockSpec((tm, h), lambda i: (i, 0))),
        compiler_params=pltpu.CompilerParams(
            dimension_semantics=("parallel",),
            vmem_limit_bytes=_vmem_limit()),
    )(a, xw, b)


def pool_classify(pool_mat, h, wc, bc, *, tk):
    g, n = pool_mat.shape
    hdim = h.shape[1]
    c = wc.shape[1]
    return pl.pallas_call(
        pool_classify_kernel,
        out_shape=jax.ShapeDtypeStruct((g, c), jnp.float32),
        grid_spec=pltpu.PrefetchScalarGridSpec(
            num_scalar_prefetch=0,
            grid=(n // tk,),
            in_specs=[pl.BlockSpec((g, tk), lambda k: (0, k)),     # P strip (f32)
                      pl.BlockSpec((tk, hdim), lambda k: (k, 0)),  # H strip (bf16)
                      pl.BlockSpec((hdim, c), lambda k: (0, 0)),   # classifier W
                      pl.BlockSpec((1, c), lambda k: (0, 0))],     # classifier b
            out_specs=pl.BlockSpec((g, c), lambda k: (0, 0)),
            scratch_shapes=[pltpu.VMEM((g, hdim), jnp.float32)]),
        compiler_params=pltpu.CompilerParams(
            dimension_semantics=("arbitrary",),
            vmem_limit_bytes=_vmem_limit()),
    )(pool_mat, h, wc, bc)


# ------------------------------- glue (JAX) ---------------------------------

def fold_bn_into_linear(w, b, gamma, beta, mean, var):
    """Fold eval-mode BatchNorm + conv bias into the projection weights."""
    scale = gamma * jax.lax.rsqrt(var + EPS)
    return w * scale[None, :], (b - mean) * scale + beta


def normalized_adjacency(edge_index, num_nodes):
    """Dense D^-1/2 (A + I) D^-1/2 matching GCNConv's gcn_norm:
    duplicate edges scatter-add; self-loops only added where missing."""
    src, dst = edge_index[0], edge_index[1]
    a = jnp.zeros((num_nodes, num_nodes), jnp.float32).at[dst, src].add(1.0)
    diag = jnp.diagonal(a)
    a = a + jnp.diag(jnp.where(diag > 0.0, 0.0, 1.0))
    deg = a.sum(axis=1)
    d_inv_sqrt = jnp.where(deg > 0.0, jax.lax.rsqrt(deg), 0.0)
    return a * d_inv_sqrt[:, None] * d_inv_sqrt[None, :]


def mean_pool_matrix(batch, num_graphs, num_nodes):
    """P[g, n] = 1/|graph g| if batch[n] == g else 0."""
    onehot = (batch[None, :] == jnp.arange(num_graphs)[:, None]).astype(jnp.float32)
    counts = jnp.maximum(onehot.sum(axis=1, keepdims=True), 1.0)
    return onehot / counts


def init_params(key, num_node_features, hidden_channels, num_classes):
    k = jax.random.split(key, 4)
    h = hidden_channels
    return {
        # GCNConv weights [in, out]; conv biases [out].
        "w1": jax.random.normal(k[0], (num_node_features, h), jnp.float32) * 0.1,
        "b1": jnp.zeros((h,), jnp.float32),
        "w2": jax.random.normal(k[1], (h, h), jnp.float32) * 0.1,
        "b2": jnp.zeros((h,), jnp.float32),
        # BatchNorm (eval): gamma, beta, running_mean, running_var.
        "g1": jnp.ones((h,), jnp.float32), "be1": jnp.zeros((h,), jnp.float32),
        "m1": jnp.zeros((h,), jnp.float32), "v1": jnp.ones((h,), jnp.float32),
        "g2": jnp.ones((h,), jnp.float32), "be2": jnp.zeros((h,), jnp.float32),
        "m2": jnp.zeros((h,), jnp.float32), "v2": jnp.ones((h,), jnp.float32),
        # Classifier Linear stored pre-transposed as [H, C], bias [C].
        "wc": jax.random.normal(k[2], (h, num_classes), jnp.float32) * 0.1,
        "bc": jax.random.normal(k[3], (num_classes,), jnp.float32) * 0.1,
    }


@jax.jit
def gcn2_forward(params, x, a_norm, pool_mat):
    n, f_in = x.shape
    h = params["w1"].shape[1]
    c = params["wc"].shape[1]
    g = pool_mat.shape[0]

    # Padding kept at 128 granularity, never tied to the tile size.
    n_pad = _round_up(n, 128)
    h_pad = _round_up(h, 128)
    c_pad = _round_up(c, 128)
    g_pad = _round_up(g, 8)

    # Fold eval-mode BN + conv bias into the projection weights (pure win, exact).
    w1, b1 = fold_bn_into_linear(params["w1"], params["b1"], params["g1"],
                                 params["be1"], params["m1"], params["v1"])
    w2, b2 = fold_bn_into_linear(params["w2"], params["b2"], params["g2"],
                                 params["be2"], params["m2"], params["v2"])

    # Zero-pad to TPU-friendly shapes (padding is inert: A / P have zero columns for
    # padded nodes; padded hidden / class columns carry zero weights and zero bias).
    # bf16 operands everywhere the MXU is involved; f32 accumulation.
    x_p = _pad2(x, (n_pad, f_in)).astype(jnp.bfloat16)
    a_p = _pad2(a_norm, (n_pad, n_pad)).astype(jnp.bfloat16)
    w1_p = _pad2(w1, (f_in, h_pad)).astype(jnp.bfloat16)
    b1_p = _pad2(b1[None, :], (1, h_pad))
    w2_p = _pad2(w2, (h_pad, h_pad)).astype(jnp.bfloat16)
    b2_p = _pad2(b2[None, :], (1, h_pad))
    wc_p = _pad2(params["wc"], (h_pad, c_pad))
    bc_p = _pad2(params["bc"][None, :], (1, c_pad))
    p_p = _pad2(pool_mat, (g_pad, n_pad))

    if n_pad <= FUSED_MAX_NODES:
        # Small-graph path: one kernel, zero intermediate HBM round-trips.
        out = gcn2_fused(a_p, x_p, w1_p, b1_p, w2_p, b2_p, p_p, wc_p, bc_p)
    else:
        # Large-graph path: tiled kernels with resident XW and bf16 intermediates.
        tm = _pick_row_tile(n_pad)
        h1 = aggregate(a_p, project(x_p, w1_p, tm=tm), b1_p, tm=tm)
        h2 = aggregate(a_p, project(h1, w2_p, tm=tm), b2_p, tm=tm)
        out = pool_classify(p_p, h2, wc_p, bc_p, tk=tm)
    return out[:g, :c]


def gcn2_reference(params, x, a_norm, pool_mat):
    """Pure-JAX f32 reference (PyTorch eval-mode semantics)."""
    w1, b1 = fold_bn_into_linear(params["w1"], params["b1"], params["g1"],
                                 params["be1"], params["m1"], params["v1"])
    w2, b2 = fold_bn_into_linear(params["w2"], params["b2"], params["g2"],
                                 params["be2"], params["m2"], params["v2"])
    h1 = jnp.maximum(a_norm @ (x @ w1) + b1, 0.0)
    h2 = jnp.maximum(a_norm @ (h1 @ w2) + b2, 0.0)
    return jax.nn.sigmoid(pool_mat @ h2 @ params["wc"] + params["bc"])


# TODO(synk): training-mode dropout / batch-statistics BatchNorm not implemented
# (forward matches PyTorch .eval() semantics).
# TODO(synk): block-sparse A path (scalar-prefetched per-row-tile column lists +
# pl.when skip of empty tiles) is the right move for production-size sparse graphs.

if __name__ == "__main__":
    key = jax.random.PRNGKey(0)
    kx, ke, kp, kx2, ke2 = jax.random.split(key, 5)

    num_node_features = 16
    hidden_channels = 32
    num_classes = 4
    params = init_params(kp, num_node_features, hidden_channels, num_classes)

    def run_case(kx_, ke_, num_nodes, num_edges, num_graphs):
        x = jax.random.normal(kx_, (num_nodes, num_node_features), jnp.float32)
        edge_index = jax.random.randint(ke_, (2, num_edges), 0, num_nodes, jnp.int32)
        batch = jnp.minimum(jnp.arange(num_nodes) // (num_nodes // num_graphs),
                            num_graphs - 1).astype(jnp.int32)
        a_norm = normalized_adjacency(edge_index, num_nodes)
        pool_mat = mean_pool_matrix(batch, num_graphs, num_nodes)
        out = jax.block_until_ready(gcn2_forward(params, x, a_norm, pool_mat))
        ref = jax.block_until_ready(gcn2_reference(params, x, a_norm, pool_mat))
        assert out.shape == (num_graphs, num_classes)
        assert bool(jnp.all(jnp.isfinite(out)))
        assert bool(jnp.all((out >= 0.0) & (out <= 1.0)))
        assert float(jnp.max(jnp.abs(out - ref))) < 5e-2
        return out

    # Small graph -> fused single-kernel path.
    run_case(kx, ke, num_nodes=300, num_edges=900, num_graphs=2)
    # Larger graph -> tiled split path (project / resident-XW aggregate / tiled pool).
    run_case(kx2, ke2, num_nodes=1500, num_edges=4500, num_graphs=3)

    print("KERNEL_OK")
</pallas_src>

<mosaic_0001>
module attributes {stable_mosaic.version = 11 : i64} {
  func.func @gcn2_fused_kernel(%arg0: memref<384x384xbf16, #tpu.memory_space<vmem>>, %arg1: memref<384x16xbf16, #tpu.memory_space<vmem>>, %arg2: memref<16x128xbf16, #tpu.memory_space<vmem>>, %arg3: memref<1x128xf32, #tpu.memory_space<vmem>>, %arg4: memref<128x128xbf16, #tpu.memory_space<vmem>>, %arg5: memref<1x128xf32, #tpu.memory_space<vmem>>, %arg6: memref<8x384xf32, #tpu.memory_space<vmem>>, %arg7: memref<128x128xf32, #tpu.memory_space<vmem>>, %arg8: memref<1x128xf32, #tpu.memory_space<vmem>>, %arg9: memref<8x128xf32, #tpu.memory_space<vmem>>) attributes {dimension_semantics = [], scalar_prefetch = 0 : i64, scratch_operands = 0 : i64, tpu.core_type = #tpu.core_type<tc>} {
    %c0 = arith.constant 0 : index
    %c0_0 = arith.constant 0 : index
    %0 = vector.load %arg0[%c0, %c0_0] : memref<384x384xbf16, #tpu.memory_space<vmem>>, vector<384x384xbf16>
    %c0_1 = arith.constant 0 : index
    %c0_2 = arith.constant 0 : index
    %1 = vector.load %arg1[%c0_1, %c0_2] : memref<384x16xbf16, #tpu.memory_space<vmem>>, vector<384x16xbf16>
    %c0_3 = arith.constant 0 : index
    %c0_4 = arith.constant 0 : index
    %2 = vector.load %arg2[%c0_3, %c0_4] : memref<16x128xbf16, #tpu.memory_space<vmem>>, vector<16x128xbf16>
    %cst = arith.constant dense<0.000000e+00> : vector<384x128xf32>
    %3 = tpu.matmul %1, %2, %cst {dimension_numbers = #tpu.dot_dimension_numbers<[1], [0], [0], [1], [0, 0, 1, 1], [], []>} : vector<384x16xbf16>, vector<16x128xbf16>, vector<384x128xf32> -> vector<384x128xf32>
    %4 = arith.truncf %3 : vector<384x128xf32> to vector<384x128xbf16>
    %cst_5 = arith.constant dense<0.000000e+00> : vector<384x128xf32>
    %5 = tpu.matmul %0, %4, %cst_5 {dimension_numbers = #tpu.dot_dimension_numbers<[1], [0], [0], [1], [0, 0, 1, 1], [], []>} : vector<384x384xbf16>, vector<384x128xbf16>, vector<384x128xf32> -> vector<384x128xf32>
    %c0_6 = arith.constant 0 : index
    %c0_7 = arith.constant 0 : index
    %6 = vector.load %arg3[%c0_6, %c0_7] : memref<1x128xf32, #tpu.memory_space<vmem>>, vector<1x128xf32>
    %7 = vector.broadcast %6 : vector<1x128xf32> to vector<384x128xf32>
    %8 = arith.addf %5, %7 : vector<384x128xf32>
    %cst_8 = arith.constant 0.000000e+00 : f32
    %9 = vector.broadcast %cst_8 : f32 to vector<384x128xf32>
    %10 = arith.maximumf %8, %9 : vector<384x128xf32>
    %11 = arith.truncf %10 : vector<384x128xf32> to vector<384x128xbf16>
    %c0_9 = arith.constant 0 : index
    %c0_10 = arith.constant 0 : index
    %12 = vector.load %arg4[%c0_9, %c0_10] : memref<128x128xbf16, #tpu.memory_space<vmem>>, vector<128x128xbf16>
    %cst_11 = arith.constant dense<0.000000e+00> : vector<384x128xf32>
    %13 = tpu.matmul %11, %12, %cst_11 {dimension_numbers = #tpu.dot_dimension_numbers<[1], [0], [0], [1], [0, 0, 1, 1], [], []>} : vector<384x128xbf16>, vector<128x128xbf16>, vector<384x128xf32> -> vector<384x128xf32>
    %14 = arith.truncf %13 : vector<384x128xf32> to vector<384x128xbf16>
    %cst_12 = arith.constant dense<0.000000e+00> : vector<384x128xf32>
    %15 = tpu.matmul %0, %14, %cst_12 {dimension_numbers = #tpu.dot_dimension_numbers<[1], [0], [0], [1], [0, 0, 1, 1], [], []>} : vector<384x384xbf16>, vector<384x128xbf16>, vector<384x128xf32> -> vector<384x128xf32>
    %c0_13 = arith.constant 0 : index
    %c0_14 = arith.constant 0 : index
    %16 = vector.load %arg5[%c0_13, %c0_14] : memref<1x128xf32, #tpu.memory_space<vmem>>, vector<1x128xf32>
    %17 = vector.broadcast %16 : vector<1x128xf32> to vector<384x128xf32>
    %18 = arith.addf %15, %17 : vector<384x128xf32>
    %cst_15 = arith.constant 0.000000e+00 : f32
    %19 = vector.broadcast %cst_15 : f32 to vector<384x128xf32>
    %20 = arith.maximumf %18, %19 : vector<384x128xf32>
    %c0_16 = arith.constant 0 : index
    %c0_17 = arith.constant 0 : index
    %21 = vector.load %arg6[%c0_16, %c0_17] : memref<8x384xf32, #tpu.memory_space<vmem>>, vector<8x384xf32>
    %cst_18 = arith.constant dense<0.000000e+00> : vector<8x128xf32>
    %22 = tpu.matmul %21, %20, %cst_18 {dimension_numbers = #tpu.dot_dimension_numbers<[1], [0], [0], [1], [0, 0, 1, 1], [], []>} : vector<8x384xf32>, vector<384x128xf32>, vector<8x128xf32> -> vector<8x128xf32>
    %c0_19 = arith.constant 0 : index
    %c0_20 = arith.constant 0 : index
    %23 = vector.load %arg7[%c0_19, %c0_20] : memref<128x128xf32, #tpu.memory_space<vmem>>, vector<128x128xf32>
    %cst_21 = arith.constant dense<0.000000e+00> : vector<8x128xf32>
    %24 = tpu.matmul %22, %23, %cst_21 {dimension_numbers = #tpu.dot_dimension_numbers<[1], [0], [0], [1], [0, 0, 1, 1], [], []>} : vector<8x128xf32>, vector<128x128xf32>, vector<8x128xf32> -> vector<8x128xf32>
    %c0_22 = arith.constant 0 : index
    %c0_23 = arith.constant 0 : index
    %25 = vector.load %arg8[%c0_22, %c0_23] : memref<1x128xf32, #tpu.memory_space<vmem>>, vector<1x128xf32>
    %26 = vector.broadcast %25 : vector<1x128xf32> to vector<8x128xf32>
    %27 = arith.addf %24, %26 : vector<8x128xf32>
    %28 = arith.negf %27 : vector<8x128xf32>
    %29 = math.exp %28 : vector<8x128xf32>
    %cst_24 = arith.constant 1.000000e+00 : f32
    %30 = vector.broadcast %cst_24 : f32 to vector<8x128xf32>
    %31 = arith.addf %30, %29 : vector<8x128xf32>
    %32 = arith.divf %30, %31 : vector<8x128xf32>
    %c0_25 = arith.constant 0 : index
    %c0_26 = arith.constant 0 : index
    %33 = vector.load %arg9[%c0_25, %c0_26] : memref<8x128xf32, #tpu.memory_space<vmem>>, vector<8x128xf32>
    tpu.vector_store %arg9[%c0_25, %c0_26], %32 {strides = array<i32>} : memref<8x128xf32, #tpu.memory_space<vmem>>, vector<8x128xf32>,
    return
  }
}

</mosaic_0001>

<bundles_post_ra>
// kernel: gcn2_forward.1
= control target key start
LH: loop header
LB: loop body
LE: loop exit
PB: predicated region body
PF: predicated region fallthrough
CT: control target
= control target key end

     0   :  { %vm305_vm0 = vcmask 130048   ;;  %s4157_s2 = inlined_call_operand.vmem [shape: bf16[16,128], index: 2, kind: input, shape index: {}]   ;;  %s4158_s1 = inlined_call_operand.vmem [shape: bf16[384,16], index: 1, kind: input, shape index: {}]   ;;  %s4159_s0 = inlined_call_operand.vmem [shape: bf16[384,384], index: 0, kind: input, shape index: {}]   ;;  %s4160_s3 = inlined_call_operand.vmem [shape: f32[1,128], index: 3, kind: input, shape index: {}]   ;;  %s4161_s4 = inlined_call_operand.vmem [shape: bf16[128,128], index: 4, kind: input, shape index: {}]   ;;  %s4162_s5 = inlined_call_operand.vmem [shape: f32[1,128], index: 5, kind: input, shape index: {}]   ;;  %s4163_s7 = inlined_call_operand.vmem [shape: f32[128,128], index: 7, kind: input, shape index: {}]   ;;  %s4164_s6 = inlined_call_operand.vmem [shape: f32[8,384], index: 6, kind: input, shape index: {}]   ;;  %s4165_s8 = inlined_call_operand.vmem [shape: f32[1,128], index: 8, kind: input, shape index: {}]   ;;  %s4166_s9 = inlined_call_operand.vmem [shape: f32[8,128], index: 9, kind: output, shape index: {}]  }
   0x1   :  { %v2702_v0 = vld [vmem:[%s4157_s2] sm:$0xff]  ;;  %v2679_v2 = vld [vmem:[%s4158_s1 + $0x8] sm:$0xff]  ;;  %v2680_v3 = vld [vmem:[%s4158_s1 + $0x10] sm:$0xff] }
   0x2   :  { %v2678_v1 = vld [vmem:[%s4158_s1] sm:$0xff]  ;;  %385 = vmatpush.bf16.msra.mxu0 %v2702_v0  ;;  %v2681_v4 = vld [vmem:[%s4158_s1 + $0x18] sm:$0xff]  ;;  %v2683_v6 = vld [vmem:[%s4158_s1 + $0x28] sm:$0xff] }
   0x3   :  { %v2682_v5 = vld [vmem:[%s4158_s1 + $0x20] sm:$0xff]  ;;  %v2684_v7 = vld [vmem:[%s4158_s1 + $0x30] sm:$0xff]  ;;  %v2685_v8 = vld [vmem:[%s4158_s1 + $0x38] sm:$0xff] }
   0x4   :  { %v2686_v9 = vld [vmem:[%s4158_s1 + $0x40] sm:$0xff]  ;;  %v2687_v13 = vld [vmem:[%s4158_s1 + $0x48] sm:$0xff]  ;;  %v2688_v17 = vld [vmem:[%s4158_s1 + $0x50] sm:$0xff] }
   0x5   :  { %2261 = vmatmul.msk.bf16.vlgmr.msra.gmra.mxu0 %vm305_vm0, %v2678_v1  ;;  %v2689_v21 = vld [vmem:[%s4158_s1 + $0x58] sm:$0xff]  ;;  %v2690_v25 = vld [vmem:[%s4158_s1 + $0x60] sm:$0xff]  ;;  %v2691_v28 = vld [vmem:[%s4158_s1 + $0x68] sm:$0xff] }
   0x6   :  { %v2692_v31 = vld [vmem:[%s4158_s1 + $0x70] sm:$0xff]  ;;  %v2693_v34 = vld [vmem:[%s4158_s1 + $0x78] sm:$0xff]  ;;  %v2694_v39 = vld [vmem:[%s4158_s1 + $0x80] sm:$0xff] }
   0x7   :  { %v2695_v45 = vld [vmem:[%s4158_s1 + $0x88] sm:$0xff]  ;;  %v2696_v49 = vld [vmem:[%s4158_s1 + $0x90] sm:$0xff]  ;;  %v2697_v53 = vld [vmem:[%s4158_s1 + $0x98] sm:$0xff] }
   0x8   :  { %v2698_v57 = vld [vmem:[%s4158_s1 + $0xa0] sm:$0xff]  ;;  %v2699_v60 = vld [vmem:[%s4158_s1 + $0xa8] sm:$0xff]  ;;  %v2700_v63 = vld [vmem:[%s4158_s1 + $0xb0] sm:$0xff] }
  0x15   :  { %2262 = vmatmul.msk.bf16.gmra.mxu0 %vm305_vm0, %v2679_v2  ;;  %v2701_v2 = vld [vmem:[%s4158_s1 + $0xb8] sm:$0xff] }
  0x25   :  { %2263 = vmatmul.msk.bf16.gmra.mxu0 %vm305_vm0, %v2680_v3 }
  0x35   :  { %2264 = vmatmul.msk.bf16.gmra.mxu0 %vm305_vm0, %v2681_v4 }
  0x45   :  { %2265 = vmatmul.msk.bf16.gmra.mxu0 %vm305_vm0, %v2682_v5 }
  0x55   :  { %2266 = vmatmul.msk.bf16.gmra.mxu0 %vm305_vm0, %v2683_v6 }
  0x65   :  { %2267 = vmatmul.msk.bf16.gmra.mxu0 %vm305_vm0, %v2684_v7 }
  0x75   :  { %2268 = vmatmul.msk.bf16.gmra.mxu0 %vm305_vm0, %v2685_v8 }
  0x82   :  { %v387_v10 = vpop.f32.mrf.mxu0 }
  0x85   :  { %2269 = vmatmul.msk.bf16.gmra.mxu0 %vm305_vm0, %v2686_v9 }
  0x8a   :  { %v389_v11 = vpop.f32.mrf.mxu0 }
  0x8b   :  { %v507_v12 = vpack.c.bf16 %v389_v11, %v387_v10 }
  0x92   :  { %v392_v14 = vpop.f32.mrf.mxu0 }
  0x95   :  { %2270 = vmatmul.msk.bf16.gmra.mxu0 %vm305_vm0, %v2687_v13 }
  0x9a   :  { %v394_v15 = vpop.f32.mrf.mxu0 }
  0x9b   :  { %v508_v16 = vpack.c.bf16 %v394_v15, %v392_v14 }
  0xa2   :  { %v397_v18 = vpop.f32.mrf.mxu0 }
  0xa5   :  { %2271 = vmatmul.msk.bf16.gmra.mxu0 %vm305_vm0, %v2688_v17 }
  0xaa   :  { %v399_v19 = vpop.f32.mrf.mxu0 }
  0xab   :  { %v509_v20 = vpack.c.bf16 %v399_v19, %v397_v18 }
  0xb2   :  { %v402_v22 = vpop.f32.mrf.mxu0 }
  0xb5   :  { %2272 = vmatmul.msk.bf16.gmra.mxu0 %vm305_vm0, %v2689_v21 }
  0xba   :  { %v404_v23 = vpop.f32.mrf.mxu0 }
  0xbb   :  { %v510_v24 = vpack.c.bf16 %v404_v23, %v402_v22  ;;  %v2606_v23 = vld [vmem:[%s4159_s0 + $0x4] sm:$0xf] }
  0xc2   :  { %v407_v26 = vpop.f32.mrf.mxu0 }
  0xc5   :  { %2273 = vmatmul.msk.bf16.gmra.mxu0 %vm305_vm0, %v2690_v25 }
  0xca   :  { %v409_v27 = vpop.f32.mrf.mxu0 }
  0xcb   :  { %v511_v42 = vpack.c.bf16 %v409_v27, %v407_v26  ;;  %v2287_v27 = vld [vmem:[%s4159_s0] sm:$0xf] }
  0xd2   :  { %v412_v29 = vpop.f32.mrf.mxu0 }
  0xd5   :  { %2274 = vmatmul.msk.bf16.gmra.mxu0 %vm305_vm0, %v2691_v28  ;;  %v2607_v28 = vld [vmem:[%s4159_s0 + $0x8] sm:$0xf0] }
  0xda   :  { %v414_v30 = vpop.f32.mrf.mxu0 }
  0xdb   :  { %v512_v41 = vpack.c.bf16 %v414_v30, %v412_v29  ;;  %v2887_v29 = vor.u32 %v2607_v28, %v2287_v27  ;;  %v2627_v27 = vld [vmem:[%s4159_s0 + $0xac] sm:$0xf]  ;;  %v2373_v28 = vld [vmem:[%s4159_s0 + $0xb4] sm:$0xf0] }
  0xe2   :  { %v417_v32 = vpop.f32.mrf.mxu0 }
  0xe5   :  { %2275 = vmatmul.msk.bf16.gmra.mxu0 %vm305_vm0, %v2692_v31 }
  0xea   :  { %v419_v33 = vpop.f32.mrf.mxu0 }
  0xeb   :  { %v513_v38 = vpack.c.bf16 %v419_v33, %v417_v32  ;;  %v2609_v32 = vld [vmem:[%s4159_s0 + $0x1c] sm:$0xf]  ;;  %v2301_v33 = vld [vmem:[%s4159_s0 + $0x24] sm:$0xf0] }
  0xf2   :  { %v422_v35 = vpop.f32.mrf.mxu0 }
  0xf5   :  { %2276 = vmatmul.msk.bf16.gmra.mxu0 %vm305_vm0, %v2693_v34  ;;  %v2896_v34 = vor.u32 %v2609_v32, %v2301_v33  ;;  %v2628_v32 = vld [vmem:[%s4159_s0 + $0xb0] sm:$0xf0] }
  0xfa   :  { %v424_v36 = vpop.f32.mrf.mxu0 }
  0xfb   :  { %v514_v37 = vpack.c.bf16 %v424_v36, %v422_v35  ;;  %v2299_v36 = vld [vmem:[%s4159_s0 + $0x18] sm:$0xf] }
  0xfd   :  { %919 = vmatpush.bf16.msra.mxu1 %v514_v37  ;;  %v2610_v37 = vld [vmem:[%s4159_s0 + $0x20] sm:$0xf0] }
 0x101   :  { %920 = vmatpush.bf16.msra.mxu1 %v513_v38  ;;  %v2905_v38 = vor.u32 %v2610_v37, %v2299_v36  ;;  %v2623_v36 = vld [vmem:[%s4159_s0 + $0x88] sm:$0xf0] }
 0x102   :  { %v427_v40 = vpop.f32.mrf.mxu0 }
 0x105   :  { %2277 = vmatmul.msk.bf16.gmra.mxu0 %vm305_vm0, %v2694_v39  ;;  %921 = vmatpush.bf16.msra.mxu1 %v512_v41 }
 0x109   :  { %922 = vmatpush.bf16.msra.mxu1 %v511_v42  ;;  %v2612_v42 = vld [vmem:[%s4159_s0 + $0x34] sm:$0xf] }
 0x10a   :  { %v429_v43 = vpop.f32.mrf.mxu0 }
 0x10b   :  { %v515_v44 = vpack.c.bf16 %v429_v43, %v427_v40  ;;  %v2313_v43 = vld [vmem:[%s4159_s0 + $0x3c] sm:$0xf0] }
 0x10d   :  { %923 = vmatpush.bf16.msra.mxu1 %v510_v24  ;;  %v2289_v24 = vld [vmem:[%s4159_s0 + $0xc] sm:$0xf0] }
 0x10e   :  { %v2878_v25 = vor.u32 %v2606_v23, %v2289_v24  ;;  %v2343_v23 = vld [vmem:[%s4159_s0 + $0x68] sm:$0xf]  ;;  %v2620_v24 = vld [vmem:[%s4159_s0 + $0x70] sm:$0xf0] }
 0x111   :  { %924 = vmatpush.bf16.msra.mxu1 %v509_v20 }
 0x112   :  { %v432_v46 = vpop.f32.mrf.mxu0 }
 0x115   :  { %2278 = vmatmul.msk.bf16.gmra.mxu0 %vm305_vm0, %v2695_v45  ;;  %925 = vmatpush.bf16.msra.mxu1 %v508_v16 }
 0x119   :  { %926 = vmatpush.bf16.msra.mxu1 %v507_v12 }
 0x11a   :  { %v434_v47 = vpop.f32.mrf.mxu0 }
 0x11b   :  { %v516_v48 = vpack.c.bf16 %v434_v47, %v432_v46  ;;  %v2311_v46 = vld [vmem:[%s4159_s0 + $0x30] sm:$0xf]  ;;  %v2613_v47 = vld [vmem:[%s4159_s0 + $0x38] sm:$0xf0] }
 0x11c   :  { %927 = vmatmul.bf16.vlgmr.msra.gmra.mxu1 %v2887_v29 }
 0x122   :  { %v437_v50 = vpop.f32.mrf.mxu0 }
 0x125   :  { %2279 = vmatmul.msk.bf16.gmra.mxu0 %vm305_vm0, %v2696_v49 }
 0x12a   :  { %v439_v51 = vpop.f32.mrf.mxu0 }
 0x12b   :  { %v517_v52 = vpack.c.bf16 %v439_v51, %v437_v50  ;;  %v2295_v50 = vld [vmem:[%s4159_s0 + $0x8] sm:$0xf]  ;;  %v2608_v51 = vld [vmem:[%s4159_s0 + $0x10] sm:$0xf0] }
 0x12c   :  { %932 = vmatmul.bf16.gmra.mxu1 %v2905_v38 }
 0x132   :  { %v442_v54 = vpop.f32.mrf.mxu0 }
 0x135   :  { %2280 = vmatmul.msk.bf16.gmra.mxu0 %vm305_vm0, %v2697_v53  ;;  %v2934_v53 = vor.u32 %v2608_v51, %v2295_v50  ;;  %v2367_v51 = vld [vmem:[%s4159_s0 + $0x98] sm:$0xf] }
 0x13a   :  { %v444_v55 = vpop.f32.mrf.mxu0 }
 0x13b   :  { %v518_v56 = vpack.c.bf16 %v444_v55, %v442_v54  ;;  %v2615_v54 = vld [vmem:[%s4159_s0 + $0x4c] sm:$0xf]  ;;  %v2325_v55 = vld [vmem:[%s4159_s0 + $0x54] sm:$0xf0] }
 0x142   :  { %v447_v58 = vpop.f32.mrf.mxu0 }
 0x145   :  { %2281 = vmatmul.msk.bf16.gmra.mxu0 %vm305_vm0, %v2698_v57  ;;  %v2323_v57 = vld [vmem:[%s4159_s0 + $0x48] sm:$0xf] }
 0x14a   :  { %v449_v59 = vpop.f32.mrf.mxu0 }
 0x14b   :  { %v519_v9 = vpack.c.bf16 %v449_v59, %v447_v58  ;;  %v2616_v58 = vld [vmem:[%s4159_s0 + $0x50] sm:$0xf0] }
 0x14c   :  { %v2952_v59 = vor.u32 %v2616_v58, %v2323_v57 }
 0x152   :  { %v452_v61 = vpop.f32.mrf.mxu0 }
 0x155   :  { %2282 = vmatmul.msk.bf16.gmra.mxu0 %vm305_vm0, %v2699_v60  ;;  %v2307_v60 = vld [vmem:[%s4159_s0 + $0x20] sm:$0xf] }
 0x15a   :  { %v454_v62 = vpop.f32.mrf.mxu0 }
 0x15b   :  { %v520_v8 = vpack.c.bf16 %v454_v62, %v452_v61  ;;  %v2611_v61 = vld [vmem:[%s4159_s0 + $0x28] sm:$0xf0] }
 0x15c   :  { %v2961_v62 = vor.u32 %v2611_v61, %v2307_v60  ;;  %v2706_v61 = vld [vmem:[%s4161_s4 + $0x18] sm:$0xff] }
 0x15e   :  { %4217 = vst [vmem:[#allocation2_spill] sm:$0xff] %v2961_v62 }
 0x162   :  { %v457_v0 = vpop.f32.mrf.mxu0 }
 0x165   :  { %2283 = vmatmul.msk.bf16.gmra.mxu0 %vm305_vm0, %v2700_v63  ;;  %v2618_v63 = vld [vmem:[%s4159_s0 + $0x64] sm:$0xf] }
 0x16a   :  { %v459_v1 = vpop.f32.mrf.mxu0 }
 0x16b   :  { %v521_v6 = vpack.c.bf16 %v459_v1, %v457_v0  ;;  %v2337_v0 = vld [vmem:[%s4159_s0 + $0x6c] sm:$0xf0] }
 0x16c   :  { %v2970_v1 = vor.u32 %v2618_v63, %v2337_v0  ;;  %v2633_v63 = vld [vmem:[%s4159_s0 + $0xdc] sm:$0xf]  ;;  %v2397_v0 = vld [vmem:[%s4159_s0 + $0xe4] sm:$0xf0] }
 0x172   :  { %v462_v3 = vpop.f32.mrf.mxu0 }
 0x175   :  { %2284 = vmatmul.msk.bf16.gmra.mxu0 %vm305_vm0, %v2701_v2  ;;  %v2335_v2 = vld [vmem:[%s4159_s0 + $0x60] sm:$0xf] }
 0x17a   :  { %v464_v4 = vpop.f32.mrf.mxu0 }
 0x17b   :  { %v522_v5 = vpack.c.bf16 %v464_v4, %v462_v3  ;;  %v2619_v3 = vld [vmem:[%s4159_s0 + $0x68] sm:$0xf0] }
 0x17c   :  { %v2979_v4 = vor.u32 %v2619_v3, %v2335_v2  ;;  %v3120_v2 = vor.u32 %v2633_v63, %v2397_v0  ;;  %v2705_v3 = vld [vmem:[%s4161_s4 + $0x10] sm:$0xff] }
 0x17d   :  { %1048 = vmatpush.bf16.msra.mxu2 %v522_v5  ;;  %v2319_v5 = vld [vmem:[%s4159_s0 + $0x38] sm:$0xf] }
 0x17e   :  { %4223 = vst [vmem:[#allocation8_spill] sm:$0xff] %v3120_v2 }
 0x181   :  { %1049 = vmatpush.bf16.msra.mxu2 %v521_v6  ;;  %v2614_v6 = vld [vmem:[%s4159_s0 + $0x40] sm:$0xf0] }
 0x182   :  { %v2868_v7 = vpop.f32.mrf.mxu0 }
 0x185   :  { %1050 = vmatpush.bf16.msra.mxu2 %v520_v8  ;;  %v2621_v8 = vld [vmem:[%s4159_s0 + $0x7c] sm:$0xf] }
 0x189   :  { %1051 = vmatpush.bf16.msra.mxu2 %v519_v9  ;;  %v2349_v9 = vld [vmem:[%s4159_s0 + $0x84] sm:$0xf0] }
 0x18a   :  { %v2870_v10 = vpop.f32.mrf.mxu0 }
 0x18d   :  { %1052 = vmatpush.bf16.msra.mxu2 %v518_v56  ;;  %v2943_v56 = vor.u32 %v2615_v54, %v2325_v55  ;;  %v2707_v55 = vld [vmem:[%s4161_s4 + $0x20] sm:$0xff] }
 0x191   :  { %1053 = vmatpush.bf16.msra.mxu2 %v517_v52  ;;  %v523_v52 = vpack.c.bf16 %v2870_v10, %v2868_v7  ;;  %v2988_v7 = vor.u32 %v2614_v6, %v2319_v5  ;;  %v2997_v10 = vor.u32 %v2621_v8, %v2349_v9  ;;  %v2395_v5 = vld [vmem:[%s4159_s0 + $0xd8] sm:$0xf]  ;;  %v2634_v6 = vld [vmem:[%s4159_s0 + $0xe0] sm:$0xf0] }
 0x192   :  { %v472_v11 = vpop.f32.mrf.mxu0  ;;  %v3132_v9 = vor.u32 %v2634_v6, %v2395_v5 }
 0x193   :  { %4218 = vst [vmem:[#allocation3_spill] sm:$0xff] %v2988_v7 }
 0x195   :  { %1054 = vmatpush.bf16.msra.mxu2 %v516_v48  ;;  %v2923_v48 = vor.u32 %v2613_v47, %v2311_v46  ;;  %v2631_v46 = vld [vmem:[%s4159_s0 + $0xc8] sm:$0xf0] }
 0x197   :  { %937 = vmatmul.bf16.gmra.mxu1 %v2923_v48 }
 0x199   :  { %1055 = vmatpush.bf16.msra.mxu2 %v515_v44  ;;  %v2914_v44 = vor.u32 %v2612_v42, %v2313_v43  ;;  %v2709_v43 = vld [vmem:[%s4161_s4 + $0x30] sm:$0xff]  ;;  %v928_v50 = vpop.f32.mrf.mxu1 }
 0x19a   :  { %v474_v12 = vpop.f32.mrf.mxu0 }
 0x19b   :  { %v524_v49 = vpack.c.bf16 %v474_v12, %v472_v11  ;;  %v2347_v11 = vld [vmem:[%s4159_s0 + $0x78] sm:$0xf]  ;;  %v2622_v12 = vld [vmem:[%s4159_s0 + $0x80] sm:$0xf0] }
 0x19c   :  { %1056 = vmatmul.bf16.vlgmr.msra.gmra.mxu2 %v2878_v25 }
 0x1a1   :  { %v930_v58 = vpop.f32.mrf.mxu1 }
 0x1a2   :  { %v477_v13 = vpop.f32.mrf.mxu0 }
 0x1a7   :  { %942 = vmatmul.bf16.gmra.mxu1 %v2952_v59 }
 0x1a9   :  { %v933_v8 = vpop.f32.mrf.mxu1 }
 0x1aa   :  { %v479_v14 = vpop.f32.mrf.mxu0 }
 0x1ab   :  { %v525_v45 = vpack.c.bf16 %v479_v14, %v477_v13  ;;  %v3006_v13 = vor.u32 %v2622_v12, %v2347_v11  ;;  %v2331_v14 = vld [vmem:[%s4159_s0 + $0x50] sm:$0xf]  ;;  %v2629_v12 = vld [vmem:[%s4159_s0 + $0xb8] sm:$0xf0] }
 0x1ac   :  { %1061 = vmatmul.bf16.gmra.mxu2 %v2896_v34  ;;  %v2379_v11 = vld [vmem:[%s4159_s0 + $0xb0] sm:$0xf] }
 0x1b2   :  { %v482_v15 = vpop.f32.mrf.mxu0 }
 0x1b7   :  { %947 = vmatmul.bf16.gmra.mxu1 %v2979_v4 }
 0x1ba   :  { %v484_v16 = vpop.f32.mrf.mxu0 }
 0x1bb   :  { %v526_v41 = vpack.c.bf16 %v484_v16, %v482_v15  ;;  %v2617_v15 = vld [vmem:[%s4159_s0 + $0x58] sm:$0xf0] }
 0x1bc   :  { %1066 = vmatmul.bf16.gmra.mxu2 %v2914_v44  ;;  %v3015_v16 = vor.u32 %v2617_v15, %v2331_v14  ;;  %v2704_v15 = vld [vmem:[%s4161_s4 + $0x8] sm:$0xff] }
 0x1be   :  { %4219 = vst [vmem:[#allocation4_spill] sm:$0xff] %v3015_v16 }
 0x1c2   :  { %v487_v17 = vpop.f32.mrf.mxu0 }
 0x1c7   :  { %952 = vmatmul.bf16.gmra.mxu1 %v3006_v13 }
 0x1ca   :  { %v489_v18 = vpop.f32.mrf.mxu0 }
 0x1cb   :  { %v527_v40 = vpack.c.bf16 %v489_v18, %v487_v17  ;;  %v2624_v17 = vld [vmem:[%s4159_s0 + $0x94] sm:$0xf]  ;;  %v2361_v18 = vld [vmem:[%s4159_s0 + $0x9c] sm:$0xf0] }
 0x1cc   :  { %1071 = vmatmul.bf16.gmra.mxu2 %v2943_v56 }
 0x1d2   :  { %v492_v19 = vpop.f32.mrf.mxu0 }
 0x1da   :  { %v494_v20 = vpop.f32.mrf.mxu0 }
 0x1db   :  { %v528_v39 = vpack.c.bf16 %v494_v20, %v492_v19  ;;  %v3024_v19 = vor.u32 %v2624_v17, %v2361_v18  ;;  %v2359_v20 = vld [vmem:[%s4159_s0 + $0x90] sm:$0xf]  ;;  %v3144_v17 = vor.u32 %v2629_v12, %v2379_v11  ;;  %v2703_v18 = vld [vmem:[%s4161_s4] sm:$0xff] }
 0x1dc   :  { %1076 = vmatmul.bf16.gmra.mxu2 %v2970_v1 }
 0x1dd   :  { %4224 = vst [vmem:[#allocation9_spill] sm:$0xff] %v3144_v17 }
 0x1e2   :  { %v497_v21 = vpop.f32.mrf.mxu0 }
 0x1ea   :  { %v499_v22 = vpop.f32.mrf.mxu0 }
 0x1eb   :  { %v529_v35 = vpack.c.bf16 %v499_v22, %v497_v21  ;;  %v2625_v21 = vld [vmem:[%s4159_s0 + $0x98] sm:$0xf0] }
 0x1ec   :  { %1081 = vmatmul.bf16.gmra.mxu2 %v2997_v10  ;;  %v3033_v22 = vor.u32 %v2625_v21, %v2359_v20  ;;  %v935_v20 = vpop.f32.mrf.mxu1 }
 0x1ee   :  { %957 = vmatmul.bf16.gmra.mxu1 %v3033_v22 }
 0x1f2   :  { %v502_v26 = vpop.f32.mrf.mxu0 }
 0x1fa   :  { %v504_v30 = vpop.f32.mrf.mxu0 }
 0x1fb   :  { %v530_v31 = vpack.c.bf16 %v504_v30, %v502_v26  ;;  %v3042_v26 = vor.u32 %v2620_v24, %v2343_v23  ;;  %v3051_v30 = vor.u32 %v2627_v27, %v2373_v28  ;;  %v2636_v23 = vld [vmem:[%s4159_s0 + $0xf4] sm:$0xf]  ;;  %v2409_v24 = vld [vmem:[%s4159_s0 + $0xfc] sm:$0xf0]  ;;  %v2407_v28 = vld [vmem:[%s4159_s0 + $0xf0] sm:$0xf] }
 0x1fc   :  { %1086 = vmatmul.bf16.gmra.mxu2 %v3024_v19  ;;  %v3156_v27 = vor.u32 %v2636_v23, %v2409_v24 }
 0x1fd   :  { %1177 = vmatpush.bf16.msra.mxu3 %v530_v31  ;;  %4220 = vst [vmem:[#allocation5_spill] sm:$0xff] %v3042_v26  ;;  %v2371_v31 = vld [vmem:[%s4159_s0 + $0xa8] sm:$0xf] }
 0x1fe   :  { %v3060_v33 = vor.u32 %v2628_v32, %v2371_v31  ;;  %4225 = vst [vmem:[#allocation10_spill] sm:$0xff] %v3156_v27  ;;  %v2637_v31 = vld [vmem:[%s4159_s0 + $0xf8] sm:$0xf0] }
 0x200   :  { %962 = vmatmul.bf16.gmra.mxu1 %v3060_v33 }
 0x201   :  { %1178 = vmatpush.bf16.msra.mxu3 %v529_v35  ;;  %v2355_v35 = vld [vmem:[%s4159_s0 + $0x80] sm:$0xf] }
 0x202   :  { %v3069_v37 = vor.u32 %v2623_v36, %v2355_v35  ;;  %v3167_v35 = vor.u32 %v2637_v31, %v2407_v28  ;;  %v2391_v36 = vld [vmem:[%s4159_s0 + $0xc8] sm:$0xf] }
 0x204   :  { %4221 = vst [vmem:[#allocation6_spill] sm:$0xff] %v3069_v37 }
 0x205   :  { %1179 = vmatpush.bf16.msra.mxu3 %v528_v39  ;;  %v2710_v39 = vld [vmem:[%s4161_s4 + $0x38] sm:$0xff] }
 0x206   :  { %1442 = vmatpush.bf16.msrb.mxu0 %v2710_v39  ;;  %v2632_v39 = vld [vmem:[%s4159_s0 + $0xd0] sm:$0xf0] }
 0x209   :  { %1180 = vmatpush.bf16.msra.mxu3 %v527_v40  ;;  %v2630_v40 = vld [vmem:[%s4159_s0 + $0xc4] sm:$0xf] }
 0x20a   :  { %1443 = vmatpush.bf16.msrb.mxu0 %v2709_v43  ;;  %v3183_v43 = vld [vmem:[%s4160_s3] ss:$0 sm:$0xff] }
 0x20b   :  { %v931_v0 = vadd.f32 %v3183_v43, %v930_v58  ;;  %v2635_v58 = vld [vmem:[%s4159_s0 + $0xe8] sm:$0xf0] }
 0x20c   :  { %1091 = vmatmul.bf16.gmra.mxu2 %v3051_v30 }
 0x20d   :  { %1181 = vmatpush.bf16.msra.mxu3 %v526_v41  ;;  %v2385_v41 = vld [vmem:[%s4159_s0 + $0xcc] sm:$0xf0] }
 0x20e   :  { %v3081_v42 = vor.u32 %v2630_v40, %v2385_v41  ;;  %v3178_v41 = vor.u32 %v2632_v39, %v2391_v36 }
 0x210   :  { %4226 = vst [vmem:[#allocation11_spill] sm:$0xff] %v3178_v41 }
 0x211   :  { %1182 = vmatpush.bf16.msra.mxu3 %v525_v45  ;;  %v2383_v45 = vld [vmem:[%s4159_s0 + $0xc0] sm:$0xf] }
 0x212   :  { %v3093_v47 = vor.u32 %v2631_v46, %v2383_v45 }
 0x214   :  { %967 = vmatmul.bf16.gmra.mxu1 %v3093_v47  ;;  %v3165_v32 = vpop.f32.mrf.mxu1 }
 0x215   :  { %1183 = vmatpush.bf16.msra.mxu3 %v524_v49  ;;  %v2708_v49 = vld [vmem:[%s4161_s4 + $0x28] sm:$0xff] }
 0x216   :  { %1444 = vmatpush.bf16.msrb.mxu0 %v2708_v49  ;;  %v929_v49 = vadd.f32 %v3183_v43, %v928_v50  ;;  %v2419_v50 = vld [vmem:[%s4159_s0 + $0x108] sm:$0xf] }
 0x219   :  { %1184 = vmatpush.bf16.msra.mxu3 %v523_v52  ;;  %v2626_v52 = vld [vmem:[%s4159_s0 + $0xa0] sm:$0xf0] }
 0x21a   :  { %v3108_v57 = vor.u32 %v2626_v52, %v2367_v51  ;;  %1445 = vmatpush.bf16.msrb.mxu0 %v2707_v55  ;;  %v2639_v52 = vld [vmem:[%s4159_s0 + $0x10c] sm:$0xf]  ;;  %v2421_v55 = vld [vmem:[%s4159_s0 + $0x114] sm:$0xf0] }
 0x21c   :  { %1185 = vmatmul.bf16.vlgmr.msra.gmra.mxu3 %v2934_v53  ;;  %1096 = vmatmul.bf16.gmra.mxu2 %v3081_v42  ;;  %4222 = vst [vmem:[#allocation7_spill] sm:$0xff] %v3108_v57  ;;  %v3185_v45 = vpop.f32.mrf.mxu1 }
 0x21e   :  { %1446 = vmatpush.bf16.msrb.mxu0 %v2706_v61  ;;  %v3197_v61 = vor.u32 %v2639_v52, %v2421_v55  ;;  %v934_v52 = vadd.f32 %v3183_v43, %v933_v8  ;;  %v2433_v55 = vld [vmem:[%s4159_s0 + $0x12c] sm:$0xf0]  ;;  %v2431_v8 = vld [vmem:[%s4159_s0 + $0x120] sm:$0xf] }
 0x21f   :  { %v1057_v54 = vpop.f32.mrf.mxu2 }
 0x220   :  { %4227 = vst [vmem:[#allocation12_spill] sm:$0xff] %v3197_v61  ;;  %v1058_v63 = vadd.f32 %v1057_v54, %v929_v49  ;;  %v2403_v54 = vld [vmem:[%s4159_s0 + $0xe0] sm:$0xf] }
 0x221   :  { %v3220_v24 = vor.u32 %v2635_v58, %v2403_v54 }
 0x222   :  { %1447 = vmatpush.bf16.msrb.mxu0 %v2705_v3  ;;  %v2640_v3 = vld [vmem:[%s4159_s0 + $0x110] sm:$0xf0] }
 0x223   :  { %v3209_v6 = vor.u32 %v2640_v3, %v2419_v50  ;;  %4228 = vst [vmem:[#allocation13_spill] sm:$0xff] %v3220_v24  ;;  %v936_v50 = vadd.f32 %v3183_v43, %v935_v20  ;;  %v2643_v3 = vld [vmem:[%s4159_s0 + $0x128] sm:$0xf0]  ;;  %v2638_v20 = vld [vmem:[%s4159_s0 + $0x100] sm:$0xf0] }
 0x224   :  { %972 = vmatmul.bf16.gmra.mxu1 %v3132_v9  ;;  %v3207_v5 = vpop.f32.mrf.mxu1  ;;  %v3246_v58 = vor.u32 %v2643_v3, %v2431_v8  ;;  %v939_v3 = vadd.f32 %v3183_v43, %v3165_v32  ;;  %v2443_v32 = vld [vmem:[%s4159_s0 + $0x138] sm:$0xf] }
 0x226   :  { %1448 = vmatpush.bf16.msrb.mxu0 %v2704_v15  ;;  %4230 = vst [vmem:[#allocation15_spill] sm:$0xff] %v3246_v58 }
 0x227   :  { %v1059_v60 = vpop.f32.mrf.mxu2 }
 0x228   :  { %v1060_v12 = vadd.f32 %v1059_v60, %v931_v0 }
 0x22a   :  { %1449 = vmatpush.bf16.msrb.mxu0 %v2703_v18 }
 0x22c   :  { %1190 = vmatmul.bf16.gmra.mxu3 %v2961_v62  ;;  %1101 = vmatmul.bf16.gmra.mxu2 %v3120_v2  ;;  %v3222_v36 = vpop.f32.mrf.mxu1 }
 0x22f   :  { %v1062_v14 = vpop.f32.mrf.mxu2 }
 0x230   :  { %v1063_v0 = vadd.f32 %v1062_v14, %v934_v52  ;;  %v2415_v14 = vld [vmem:[%s4159_s0 + $0xf8] sm:$0xf] }
 0x234   :  { %977 = vmatmul.bf16.gmra.mxu1 %v3167_v35  ;;  %v3244_v54 = vpop.f32.mrf.mxu1 }
 0x237   :  { %v1064_v21 = vpop.f32.mrf.mxu2 }
 0x23c   :  { %1195 = vmatmul.bf16.gmra.mxu3 %v2988_v7  ;;  %1106 = vmatmul.bf16.gmra.mxu2 %v3156_v27 }
 0x23f   :  { %v3175_v40 = vpop.f32.mrf.mxu2 }
 0x244   :  { %982 = vmatmul.bf16.gmra.mxu1 %v3209_v6 }
 0x247   :  { %v3188_v46 = vpop.f32.mrf.mxu2 }
 0x24c   :  { %1200 = vmatmul.bf16.gmra.mxu3 %v3015_v16  ;;  %1111 = vmatmul.bf16.gmra.mxu2 %v3197_v61 }
 0x24f   :  { %v3217_v11 = vpop.f32.mrf.mxu2 }
 0x254   :  { %987 = vmatmul.bf16.gmra.mxu1 %v3246_v58 }
 0x257   :  { %v3225_v49 = vpop.f32.mrf.mxu2 }
 0x25c   :  { %1205 = vmatmul.bf16.gmra.mxu3 %v3042_v26 }
 0x26c   :  { %1210 = vmatmul.bf16.gmra.mxu3 %v3069_v37 }
 0x27c   :  { %1215 = vmatmul.bf16.gmra.mxu3 %v3108_v57 }
 0x28c   :  { %1220 = vmatmul.bf16.gmra.mxu3 %v3144_v17 }
 0x29c   :  { %1225 = vmatmul.bf16.gmra.mxu3 %v3178_v41  ;;  %v944_v41 = vadd.f32 %v3183_v43, %v3207_v5  ;;  %v2455_v5 = vld [vmem:[%s4159_s0 + $0x150] sm:$0xf] }
 0x29f   :  { %v1186_v51 = vpop.f32.mrf.mxu3 }
 0x2a0   :  { %v1187_v15 = vadd.f32 %v1186_v51, %v1058_v63  ;;  %v2642_v51 = vld [vmem:[%s4159_s0 + $0x124] sm:$0xf] }
 0x2a1   :  { %v3234_v63 = vor.u32 %v2642_v51, %v2433_v55  ;;  %v3259_v51 = vpop.f32.mrf.mxu1 }
 0x2a2   :  { %v1306_v28 = vmax.f32 %v1187_v15, 0.0  ;;  %v1065_v15 = vadd.f32 %v1064_v21, %v936_v50 }
 0x2a3   :  { %4229 = vst [vmem:[#allocation14_spill] sm:$0xff] %v3234_v63  ;;  %1116 = vmatmul.bf16.gmra.mxu2 %v3234_v63 }
 0x2a7   :  { %v1188_v18 = vpop.f32.mrf.mxu3 }
 0x2a8   :  { %v1189_v23 = vadd.f32 %v1188_v18, %v1060_v12  ;;  %v3254_v12 = vpop.f32.mrf.mxu2 }
 0x2aa   :  { %v1307_v31 = vmax.f32 %v1189_v23, 0.0 }
 0x2ac   :  { %v1354_v39 = vpack.c.bf16 %v1307_v31, %v1306_v28  ;;  %1230 = vmatmul.bf16.gmra.mxu3 %v3220_v24  ;;  %v3257_v31 = vor.u32 %v2638_v20, %v2415_v14  ;;  %v1068_v14 = vadd.f32 %v3175_v40, %v939_v3  ;;  %v941_v20 = vadd.f32 %v3183_v43, %v3185_v45  ;;  %v2427_v40 = vld [vmem:[%s4159_s0 + $0x110] sm:$0xf]  ;;  %v2641_v45 = vld [vmem:[%s4159_s0 + $0x118] sm:$0xf0] }
 0x2ae   :  { %1450 = vmatmul.bf16.vlgmr.msrb.gmra.mxu0 %v1354_v39  ;;  %4231 = vst [vmem:[#allocation16_spill] sm:$0xff] %v3257_v31 }
 0x2af   :  { %v1191_v60 = vpop.f32.mrf.mxu3 }
 0x2b0   :  { %v1192_v18 = vadd.f32 %v1191_v60, %v1063_v0  ;;  %v3262_v8 = vpop.f32.mrf.mxu2  ;;  %v2645_v60 = vld [vmem:[%s4159_s0 + $0x13c] sm:$0xf]  ;;  %v2445_v0 = vld [vmem:[%s4159_s0 + $0x144] sm:$0xf0] }
 0x2b1   :  { %v3272_v50 = vor.u32 %v2645_v60, %v2445_v0  ;;  %v3298_v60 = vor.u32 %v2641_v45, %v2427_v40  ;;  %v1073_v40 = vadd.f32 %v3217_v11, %v944_v41  ;;  %v946_v45 = vadd.f32 %v3183_v43, %v3222_v36  ;;  %v2439_v41 = vld [vmem:[%s4159_s0 + $0x128] sm:$0xf]  ;;  %v2644_v11 = vld [vmem:[%s4159_s0 + $0x130] sm:$0xf0] }
 0x2b2   :  { %v1308_v39 = vmax.f32 %v1192_v18, 0.0  ;;  %v3284_v18 = vpop.f32.mrf.mxu1 }
 0x2b3   :  { %4232 = vst [vmem:[#allocation17_spill] sm:$0xff] %v3272_v50  ;;  %1121 = vmatmul.bf16.gmra.mxu2 %v3272_v50  ;;  %v949_v50 = vadd.f32 %v3183_v43, %v3244_v54  ;;  %v2467_v54 = vld [vmem:[%s4159_s0 + $0x168] sm:$0xf] }
 0x2b4   :  { %4234 = vst [vmem:[#allocation19_spill] sm:$0xff] %v3298_v60 }
 0x2b7   :  { %v1193_v23 = vpop.f32.mrf.mxu3 }
 0x2b8   :  { %v1194_v28 = vadd.f32 %v1193_v23, %v1065_v15  ;;  %v2646_v15 = vld [vmem:[%s4159_s0 + $0x140] sm:$0xf0] }
 0x2b9   :  { %v3286_v23 = vor.u32 %v2646_v15, %v2443_v32 }
 0x2ba   :  { %v1309_v52 = vmax.f32 %v1194_v28, 0.0  ;;  %v3294_v28 = vpop.f32.mrf.mxu2  ;;  %v3300_v15 = vpop.f32.mrf.mxu1 }
 0x2bb   :  { %4233 = vst [vmem:[#allocation18_spill] sm:$0xff] %v3286_v23  ;;  %992 = vmatmul.bf16.gmra.mxu1 %v3286_v23 }
 0x2bc   :  { %1235 = vmatmul.bf16.gmra.mxu3 %v3257_v31  ;;  %v1355_v55 = vpack.c.bf16 %v1309_v52, %v1308_v39  ;;  %v1070_v39 = vadd.f32 %v3188_v46, %v941_v20 }
 0x2be   :  { %1455 = vmatmul.bf16.gmra.mxu0 %v1355_v55 }
 0x2bf   :  { %v1196_v21 = vpop.f32.mrf.mxu3 }
 0x2c0   :  { %v1197_v52 = vadd.f32 %v1196_v21, %v1068_v14  ;;  %v2648_v21 = vld [vmem:[%s4159_s0 + $0x154] sm:$0xf]  ;;  %v2457_v14 = vld [vmem:[%s4159_s0 + $0x15c] sm:$0xf0] }
 0x2c1   :  { %v3313_v20 = vor.u32 %v2648_v21, %v2457_v14  ;;  %v3339_v21 = vor.u32 %v2644_v11, %v2439_v41  ;;  %v1078_v41 = vadd.f32 %v3254_v12, %v949_v50  ;;  %v951_v11 = vadd.f32 %v3183_v43, %v3259_v51  ;;  %v2451_v12 = vld [vmem:[%s4159_s0 + $0x140] sm:$0xf]  ;;  %v2647_v51 = vld [vmem:[%s4159_s0 + $0x148] sm:$0xf0] }
 0x2c2   :  { %v1310_v0 = vmax.f32 %v1197_v52, 0.0  ;;  %v3303_v24 = vpop.f32.mrf.mxu2 }
 0x2c3   :  { %4235 = vst [vmem:[#allocation20_spill] sm:$0xff] %v3313_v20  ;;  %1126 = vmatmul.bf16.gmra.mxu2 %v3313_v20 }
 0x2c4   :  { %4237 = vst [vmem:[#allocation22_spill] sm:$0xff] %v3339_v21 }
 0x2c7   :  { %v1198_v55 = vpop.f32.mrf.mxu3 }
 0x2c8   :  { %v1199_v3 = vadd.f32 %v1198_v55, %v1070_v39  ;;  %v3325_v39 = vpop.f32.mrf.mxu1  ;;  %v1075_v55 = vadd.f32 %v3225_v49, %v946_v45 }
 0x2ca   :  { %v1311_v32 = vmax.f32 %v1199_v3, 0.0  ;;  %v3335_v36 = vpop.f32.mrf.mxu2 }
 0x2cc   :  { %1240 = vmatmul.bf16.gmra.mxu3 %v3298_v60  ;;  %v1356_v31 = vpack.c.bf16 %v1311_v32, %v1310_v0 }
 0x2ce   :  { %1460 = vmatmul.bf16.gmra.mxu0 %v1356_v31  ;;  %v2649_v31 = vld [vmem:[%s4159_s0 + $0x158] sm:$0xf0] }
 0x2cf   :  { %v1201_v46 = vpop.f32.mrf.mxu3  ;;  %v3327_v52 = vor.u32 %v2649_v31, %v2455_v5 }
 0x2d0   :  { %v1202_v3 = vadd.f32 %v1201_v46, %v1073_v40  ;;  %v3341_v31 = vpop.f32.mrf.mxu1  ;;  %v2651_v46 = vld [vmem:[%s4159_s0 + $0x16c] sm:$0xf]  ;;  %v2469_v40 = vld [vmem:[%s4159_s0 + $0x174] sm:$0xf0] }
 0x2d1   :  { %4236 = vst [vmem:[#allocation21_spill] sm:$0xff] %v3327_v52  ;;  %997 = vmatmul.bf16.gmra.mxu1 %v3327_v52  ;;  %v3354_v45 = vor.u32 %v2651_v46, %v2469_v40  ;;  %v3380_v46 = vor.u32 %v2647_v51, %v2451_v12  ;;  %v954_v52 = vadd.f32 %v3183_v43, %v3284_v18  ;;  %v2479_v18 = vld [vmem:[%s4159_s0 + $0x180] sm:$0xf] }
 0x2d2   :  { %v1312_v14 = vmax.f32 %v1202_v3, 0.0  ;;  %v3344_v20 = vpop.f32.mrf.mxu2  ;;  %v956_v51 = vadd.f32 %v3183_v43, %v3300_v15  ;;  %v2650_v15 = vld [vmem:[%s4159_s0 + $0x160] sm:$0xf0] }
 0x2d3   :  { %4238 = vst [vmem:[#allocation23_spill] sm:$0xff] %v3354_v45  ;;  %1131 = vmatmul.bf16.gmra.mxu2 %v3354_v45  ;;  %v1083_v12 = vadd.f32 %v3294_v28, %v954_v52  ;;  %v2463_v28 = vld [vmem:[%s4159_s0 + $0x158] sm:$0xf] }
 0x2d4   :  { %4240 = vst [vmem:[#allocation25_spill] sm:$0xff] %v3380_v46 }
 0x2d7   :  { %v1203_v0 = vpop.f32.mrf.mxu3 }
 0x2d8   :  { %v1204_v32 = vadd.f32 %v1203_v0, %v1075_v55  ;;  %v3366_v55 = vpop.f32.mrf.mxu1  ;;  %v1080_v0 = vadd.f32 %v3262_v8, %v951_v11 }
 0x2da   :  { %v1313_v5 = vmax.f32 %v1204_v32, 0.0  ;;  %v3376_v50 = vpop.f32.mrf.mxu2 }
 0x2dc   :  { %1245 = vmatmul.bf16.gmra.mxu3 %v3339_v21  ;;  %v1357_v60 = vpack.c.bf16 %v1313_v5, %v1312_v14 }
 0x2de   :  { %1465 = vmatmul.bf16.gmra.mxu0 %v1357_v60  ;;  %v2652_v60 = vld [vmem:[%s4159_s0 + $0x170] sm:$0xf0] }
 0x2df   :  { %v1206_v49 = vpop.f32.mrf.mxu3  ;;  %v3368_v3 = vor.u32 %v2652_v60, %v2467_v54 }
 0x2e0   :  { %v1207_v32 = vadd.f32 %v1206_v49, %v1078_v41  ;;  %v3382_v60 = vpop.f32.mrf.mxu1  ;;  %v2654_v49 = vld [vmem:[%s4159_s0 + $0x184] sm:$0xf]  ;;  %v2481_v41 = vld [vmem:[%s4159_s0 + $0x18c] sm:$0xf0] }
 0x2e1   :  { %4239 = vst [vmem:[#allocation24_spill] sm:$0xff] %v3368_v3  ;;  %1002 = vmatmul.bf16.gmra.mxu1 %v3368_v3  ;;  %v3395_v11 = vor.u32 %v2654_v49, %v2481_v41  ;;  %v3421_v49 = vor.u32 %v2650_v15, %v2463_v28  ;;  %v959_v3 = vadd.f32 %v3183_v43, %v3325_v39  ;;  %v2491_v39 = vld [vmem:[%s4159_s0 + $0x198] sm:$0xf] }
 0x2e2   :  { %v1314_v40 = vmax.f32 %v1207_v32, 0.0  ;;  %v3385_v45 = vpop.f32.mrf.mxu2  ;;  %v961_v15 = vadd.f32 %v3183_v43, %v3341_v31  ;;  %v2653_v31 = vld [vmem:[%s4159_s0 + $0x178] sm:$0xf0] }
 0x2e3   :  { %4241 = vst [vmem:[#allocation26_spill] sm:$0xff] %v3395_v11  ;;  %1136 = vmatmul.bf16.gmra.mxu2 %v3395_v11  ;;  %v1088_v28 = vadd.f32 %v3335_v36, %v959_v3  ;;  %v2475_v36 = vld [vmem:[%s4159_s0 + $0x170] sm:$0xf] }
 0x2e4   :  { %4243 = vst [vmem:[#allocation28_spill] sm:$0xff] %v3421_v49 }
 0x2e7   :  { %v1208_v14 = vpop.f32.mrf.mxu3 }
 0x2e8   :  { %v1209_v5 = vadd.f32 %v1208_v14, %v1080_v0  ;;  %v3407_v0 = vpop.f32.mrf.mxu1  ;;  %v1085_v14 = vadd.f32 %v3303_v24, %v956_v51 }
 0x2ea   :  { %v1315_v54 = vmax.f32 %v1209_v5, 0.0  ;;  %v3417_v52 = vpop.f32.mrf.mxu2 }
 0x2ec   :  { %1250 = vmatmul.bf16.gmra.mxu3 %v3380_v46  ;;  %v1358_v21 = vpack.c.bf16 %v1315_v54, %v1314_v40 }
 0x2ee   :  { %1470 = vmatmul.bf16.gmra.mxu0 %v1358_v21  ;;  %v2655_v21 = vld [vmem:[%s4159_s0 + $0x188] sm:$0xf0] }
 0x2ef   :  { %v1211_v8 = vpop.f32.mrf.mxu3  ;;  %v3409_v32 = vor.u32 %v2655_v21, %v2479_v18 }
 0x2f0   :  { %v1212_v5 = vadd.f32 %v1211_v8, %v1083_v12  ;;  %v3423_v21 = vpop.f32.mrf.mxu1  ;;  %v2657_v8 = vld [vmem:[%s4159_s0 + $0x19c] sm:$0xf]  ;;  %v2493_v12 = vld [vmem:[%s4159_s0 + $0x1a4] sm:$0xf0] }
 0x2f1   :  { %4242 = vst [vmem:[#allocation27_spill] sm:$0xff] %v3409_v32  ;;  %1007 = vmatmul.bf16.gmra.mxu1 %v3409_v32  ;;  %v3436_v51 = vor.u32 %v2657_v8, %v2493_v12  ;;  %v3462_v8 = vor.u32 %v2653_v31, %v2475_v36  ;;  %v964_v32 = vadd.f32 %v3183_v43, %v3366_v55 }
 0x2f2   :  { %v1316_v41 = vmax.f32 %v1212_v5, 0.0  ;;  %v3426_v11 = vpop.f32.mrf.mxu2  ;;  %v966_v31 = vadd.f32 %v3183_v43, %v3382_v60  ;;  %v2656_v60 = vld [vmem:[%s4159_s0 + $0x190] sm:$0xf0] }
 0x2f3   :  { %4244 = vst [vmem:[#allocation29_spill] sm:$0xff] %v3436_v51  ;;  %1141 = vmatmul.bf16.gmra.mxu2 %v3436_v51  ;;  %v1093_v36 = vadd.f32 %v3376_v50, %v964_v32  ;;  %v2487_v50 = vld [vmem:[%s4159_s0 + $0x188] sm:$0xf] }
 0x2f4   :  { %4246 = vst [vmem:[#allocation31_spill] sm:$0xff] %v3462_v8 }
 0x2f7   :  { %v1213_v40 = vpop.f32.mrf.mxu3 }
 0x2f8   :  { %v1214_v54 = vadd.f32 %v1213_v40, %v1085_v14  ;;  %v3448_v14 = vpop.f32.mrf.mxu1  ;;  %v1090_v40 = vadd.f32 %v3344_v20, %v961_v15 }
 0x2fa   :  { %v1317_v18 = vmax.f32 %v1214_v54, 0.0  ;;  %v3458_v3 = vpop.f32.mrf.mxu2 }
 0x2fc   :  { %1255 = vmatmul.bf16.gmra.mxu3 %v3421_v49  ;;  %v1359_v46 = vpack.c.bf16 %v1317_v18, %v1316_v41 }
 0x2fe   :  { %1475 = vmatmul.bf16.gmra.mxu0 %v1359_v46  ;;  %v2658_v46 = vld [vmem:[%s4159_s0 + $0x1a0] sm:$0xf0] }
 0x2ff   :  { %v1216_v24 = vpop.f32.mrf.mxu3  ;;  %v3450_v5 = vor.u32 %v2658_v46, %v2491_v39 }
 0x300   :  { %v1217_v54 = vadd.f32 %v1216_v24, %v1088_v28  ;;  %v3464_v46 = vpop.f32.mrf.mxu1  ;;  %v2660_v24 = vld [vmem:[%s4159_s0 + $0x1b4] sm:$0xf]  ;;  %v2505_v28 = vld [vmem:[%s4159_s0 + $0x1bc] sm:$0xf0] }
 0x301   :  { %4245 = vst [vmem:[#allocation30_spill] sm:$0xff] %v3450_v5  ;;  %1012 = vmatmul.bf16.gmra.mxu1 %v3450_v5  ;;  %v3477_v15 = vor.u32 %v2660_v24, %v2505_v28  ;;  %v3503_v24 = vor.u32 %v2656_v60, %v2487_v50  ;;  %v969_v5 = vadd.f32 %v3183_v43, %v3407_v0 }
 0x302   :  { %v1318_v12 = vmax.f32 %v1217_v54, 0.0  ;;  %v3467_v51 = vpop.f32.mrf.mxu2  ;;  %v971_v60 = vadd.f32 %v3183_v43, %v3423_v21  ;;  %v2659_v21 = vld [vmem:[%s4159_s0 + $0x1a8] sm:$0xf0] }
 0x303   :  { %4247 = vst [vmem:[#allocation32_spill] sm:$0xff] %v3477_v15  ;;  %1146 = vmatmul.bf16.gmra.mxu2 %v3477_v15  ;;  %v1098_v50 = vadd.f32 %v3417_v52, %v969_v5  ;;  %v2499_v52 = vld [vmem:[%s4159_s0 + $0x1a0] sm:$0xf] }
 0x304   :  { %4249 = vst [vmem:[#allocation34_spill] sm:$0xff] %v3503_v24 }
 0x307   :  { %v1218_v41 = vpop.f32.mrf.mxu3 }
 0x308   :  { %v1219_v18 = vadd.f32 %v1218_v41, %v1090_v40  ;;  %v3483_v55 = vpop.f32.mrf.mxu1  ;;  %v2661_v40 = vld [vmem:[%s4159_s0 + $0x1b8] sm:$0xf0]  ;;  %v1095_v41 = vadd.f32 %v3385_v45, %v966_v31 }
 0x30a   :  { %v1319_v39 = vmax.f32 %v1219_v18, 0.0  ;;  %v3499_v32 = vpop.f32.mrf.mxu2 }
 0x30c   :  { %1260 = vmatmul.bf16.gmra.mxu3 %v3462_v8  ;;  %v1360_v49 = vpack.c.bf16 %v1319_v39, %v1318_v12 }
 0x30e   :  { %1480 = vmatmul.bf16.gmra.mxu0 %v1360_v49  ;;  %v2503_v49 = vld [vmem:[%s4159_s0 + $0x1b0] sm:$0xf] }
 0x30f   :  { %v1221_v20 = vpop.f32.mrf.mxu3  ;;  %v3491_v54 = vor.u32 %v2661_v40, %v2503_v49 }
 0x310   :  { %v1222_v18 = vadd.f32 %v1221_v20, %v1093_v36  ;;  %v3505_v40 = vpop.f32.mrf.mxu1  ;;  %v2663_v20 = vld [vmem:[%s4159_s0 + $0x1cc] sm:$0xf]  ;;  %v2517_v36 = vld [vmem:[%s4159_s0 + $0x1d4] sm:$0xf0] }
 0x311   :  { %4248 = vst [vmem:[#allocation33_spill] sm:$0xff] %v3491_v54  ;;  %1017 = vmatmul.bf16.gmra.mxu1 %v3491_v54  ;;  %v3518_v31 = vor.u32 %v2663_v20, %v2517_v36  ;;  %v3544_v20 = vor.u32 %v2659_v21, %v2499_v52 }
 0x312   :  { %v1320_v28 = vmax.f32 %v1222_v18, 0.0  ;;  %v3508_v15 = vpop.f32.mrf.mxu2 }
 0x313   :  { %4250 = vst [vmem:[#allocation35_spill] sm:$0xff] %v3518_v31  ;;  %1151 = vmatmul.bf16.gmra.mxu2 %v3518_v31 }
 0x314   :  { %4252 = vst [vmem:[#allocation37_spill] sm:$0xff] %v3544_v20 }
 0x317   :  { %v1223_v12 = vpop.f32.mrf.mxu3 }
 0x318   :  { %v1224_v39 = vadd.f32 %v1223_v12, %v1095_v41  ;;  %v3524_v0 = vpop.f32.mrf.mxu1  ;;  %v2664_v41 = vld [vmem:[%s4159_s0 + $0x1d0] sm:$0xf0]  ;;  %v1100_v12 = vadd.f32 %v3426_v11, %v971_v60  ;;  %v974_v11 = vadd.f32 %v3183_v43, %v3448_v14  ;;  %v2529_v60 = vld [vmem:[%s4159_s0 + $0x1ec] sm:$0xf0] }
 0x31a   :  { %v1321_v49 = vmax.f32 %v1224_v39, 0.0  ;;  %v3540_v5 = vpop.f32.mrf.mxu2  ;;  %v1103_v21 = vadd.f32 %v3458_v3, %v974_v11 }
 0x31c   :  { %1265 = vmatmul.bf16.gmra.mxu3 %v3503_v24  ;;  %v1361_v8 = vpack.c.bf16 %v1321_v49, %v1320_v28 }
 0x31e   :  { %1485 = vmatmul.bf16.gmra.mxu0 %v1361_v8  ;;  %v2515_v8 = vld [vmem:[%s4159_s0 + $0x1c8] sm:$0xf] }
 0x31f   :  { %v1226_v45 = vpop.f32.mrf.mxu3  ;;  %v3532_v18 = vor.u32 %v2664_v41, %v2515_v8 }
 0x320   :  { %v1227_v39 = vadd.f32 %v1226_v45, %v1098_v50  ;;  %v3548_v24 = vpop.f32.mrf.mxu1  ;;  %v2666_v50 = vld [vmem:[%s4159_s0 + $0x1e4] sm:$0xf] }
 0x321   :  { %4251 = vst [vmem:[#allocation36_spill] sm:$0xff] %v3532_v18  ;;  %1022 = vmatmul.bf16.gmra.mxu1 %v3532_v18  ;;  %v3561_v52 = vor.u32 %v2666_v50, %v2529_v60 }
 0x322   :  { %v1322_v36 = vmax.f32 %v1227_v39, 0.0  ;;  %v3551_v54 = vpop.f32.mrf.mxu2  ;;  %v2527_v39 = vld [vmem:[%s4159_s0 + $0x1e0] sm:$0xf] }
 0x323   :  { %4253 = vst [vmem:[#allocation38_spill] sm:$0xff] %v3561_v52  ;;  %1156 = vmatmul.bf16.gmra.mxu2 %v3561_v52 }
 0x327   :  { %v1228_v28 = vpop.f32.mrf.mxu3 }
 0x328   :  { %v1229_v49 = vadd.f32 %v1228_v28, %v1100_v12  ;;  %v976_v12 = vadd.f32 %v3183_v43, %v3464_v46  ;;  %v2667_v28 = vld [vmem:[%s4159_s0 + $0x1e8] sm:$0xf0]  ;;  %v2511_v46 = vld [vmem:[%s4159_s0 + $0x1b8] sm:$0xf] }
 0x32a   :  { %v1323_v8 = vmax.f32 %v1229_v49, 0.0  ;;  %v3577_v49 = vor.u32 %v2667_v28, %v2527_v39  ;;  %v1105_v11 = vadd.f32 %v3467_v51, %v976_v12  ;;  %v979_v51 = vadd.f32 %v3183_v43, %v3483_v55  ;;  %v2541_v12 = vld [vmem:[%s4159_s0 + $0x204] sm:$0xf0] }
 0x32b   :  { %v3546_v41 = vpop.f32.mrf.mxu0 }
 0x32c   :  { %1270 = vmatmul.bf16.gmra.mxu3 %v3544_v20  ;;  %v1362_v31 = vpack.c.bf16 %v1323_v8, %v1322_v36  ;;  %4254 = vst [vmem:[#allocation39_spill] sm:$0xff] %v3577_v49  ;;  %v2662_v36 = vld [vmem:[%s4159_s0 + $0x1c0] sm:$0xf0]  ;;  %v3587_v8 = vpop.f32.mrf.mxu2 }
 0x32d   :  { %v3591_v28 = vor.u32 %v2662_v36, %v2511_v46  ;;  %v1108_v36 = vadd.f32 %v3499_v32, %v979_v51 }
 0x32e   :  { %1490 = vmatmul.bf16.gmra.mxu0 %v1362_v31  ;;  %v3569_v31 = vpop.f32.mrf.mxu1 }
 0x32f   :  { %v1231_v45 = vpop.f32.mrf.mxu3  ;;  %4255 = vst [vmem:[#allocation40_spill] sm:$0xff] %v3591_v28  ;;  %v989_v37 = vadd.f32 %v3183_v43, %v3569_v31  ;;  %v2563_v31 = vld [vmem:[%s4159_s0 + $0x228] sm:$0xf] }
 0x330   :  { %v1232_v50 = vadd.f32 %v1231_v45, %v1103_v21  ;;  %v2669_v21 = vld [vmem:[%s4159_s0 + $0x1fc] sm:$0xf] }
 0x331   :  { %1027 = vmatmul.bf16.gmra.mxu1 %v3577_v49  ;;  %v3608_v46 = vor.u32 %v2669_v21, %v2541_v12 }
 0x332   :  { %v1324_v3 = vmax.f32 %v1232_v50, 0.0 }
 0x333   :  { %v3567_v14 = vpop.f32.mrf.mxu0  ;;  %4256 = vst [vmem:[#allocation41_spill] sm:$0xff] %v3608_v46  ;;  %1161 = vmatmul.bf16.gmra.mxu2 %v3608_v46 }
 0x334   :  { %v3598_v23 = vpop.f32.mrf.mxu2 }
 0x336   :  { %v3595_v18 = vpop.f32.mrf.mxu1 }
 0x337   :  { %v1233_v60 = vpop.f32.mrf.mxu3 }
 0x338   :  { %v1234_v39 = vadd.f32 %v1233_v60, %v1105_v11  ;;  %v2670_v11 = vld [vmem:[%s4159_s0 + $0x200] sm:$0xf0]  ;;  %v2665_v60 = vld [vmem:[%s4159_s0 + $0x1d8] sm:$0xf0] }
 0x33a   :  { %v1325_v20 = vmax.f32 %v1234_v39, 0.0 }
 0x33b   :  { %v3593_v52 = vpop.f32.mrf.mxu0 }
 0x33c   :  { %1275 = vmatmul.bf16.gmra.mxu3 %v3591_v28  ;;  %v1363_v17 = vpack.c.bf16 %v1325_v20, %v1324_v3  ;;  %v981_v20 = vadd.f32 %v3183_v43, %v3505_v40  ;;  %v2539_v3 = vld [vmem:[%s4159_s0 + $0x1f8] sm:$0xf]  ;;  %v2523_v40 = vld [vmem:[%s4159_s0 + $0x1d0] sm:$0xf]  ;;  %v3634_v39 = vpop.f32.mrf.mxu2 }
 0x33d   :  { %v3624_v50 = vor.u32 %v2670_v11, %v2539_v3  ;;  %v3638_v11 = vor.u32 %v2665_v60, %v2523_v40 }
 0x33e   :  { %1495 = vmatmul.bf16.gmra.mxu0 %v1363_v17  ;;  %v3616_v17 = vpop.f32.mrf.mxu1  ;;  %v1110_v51 = vadd.f32 %v3508_v15, %v981_v20  ;;  %v984_v15 = vadd.f32 %v3183_v43, %v3524_v0  ;;  %v2553_v20 = vld [vmem:[%s4159_s0 + $0x21c] sm:$0xf0] }
 0x33f   :  { %v1236_v45 = vpop.f32.mrf.mxu3  ;;  %4257 = vst [vmem:[#allocation42_spill] sm:$0xff] %v3624_v50  ;;  %v994_v26 = vadd.f32 %v3183_v43, %v3616_v17 }
 0x340   :  { %v1237_v21 = vadd.f32 %v1236_v45, %v1108_v36  ;;  %4258 = vst [vmem:[#allocation43_spill] sm:$0xff] %v3638_v11  ;;  %v2672_v36 = vld [vmem:[%s4159_s0 + $0x214] sm:$0xf]  ;;  %v1113_v60 = vadd.f32 %v3540_v5, %v984_v15 }
 0x341   :  { %1032 = vmatmul.bf16.gmra.mxu1 %v3624_v50  ;;  %v3655_v40 = vor.u32 %v2672_v36, %v2553_v20 }
 0x342   :  { %v1326_v32 = vmax.f32 %v1237_v21, 0.0 }
 0x343   :  { %v3614_v55 = vpop.f32.mrf.mxu0  ;;  %4259 = vst [vmem:[#allocation44_spill] sm:$0xff] %v3655_v40  ;;  %1166 = vmatmul.bf16.gmra.mxu2 %v3655_v40 }
 0x344   :  { %v3645_v57 = vpop.f32.mrf.mxu2 }
 0x346   :  { %v3642_v49 = vpop.f32.mrf.mxu1 }
 0x347   :  { %v1238_v12 = vpop.f32.mrf.mxu3 }
 0x348   :  { %v1239_v3 = vadd.f32 %v1238_v12, %v1110_v51  ;;  %v2673_v51 = vld [vmem:[%s4159_s0 + $0x218] sm:$0xf0]  ;;  %v2668_v12 = vld [vmem:[%s4159_s0 + $0x1f0] sm:$0xf0] }
 0x34a   :  { %v1327_v28 = vmax.f32 %v1239_v3, 0.0 }
 0x34b   :  { %v3640_v46 = vpop.f32.mrf.mxu0 }
 0x34c   :  { %1280 = vmatmul.bf16.gmra.mxu3 %v3638_v11  ;;  %v1364_v63 = vpack.c.bf16 %v1327_v28, %v1326_v32  ;;  %v986_v28 = vadd.f32 %v3183_v43, %v3548_v24  ;;  %v2551_v32 = vld [vmem:[%s4159_s0 + $0x210] sm:$0xf]  ;;  %v2535_v24 = vld [vmem:[%s4159_s0 + $0x1e8] sm:$0xf]  ;;  %v3681_v3 = vpop.f32.mrf.mxu2 }
 0x34d   :  { %v3671_v21 = vor.u32 %v2673_v51, %v2551_v32  ;;  %v3685_v51 = vor.u32 %v2668_v12, %v2535_v24  ;;  %v1118_v12 = vadd.f32 %v3587_v8, %v989_v37  ;;  %v2671_v8 = vld [vmem:[%s4159_s0 + $0x208] sm:$0xf0] }
 0x34e   :  { %1500 = vmatmul.bf16.gmra.mxu0 %v1364_v63  ;;  %v3663_v63 = vpop.f32.mrf.mxu1  ;;  %v1115_v15 = vadd.f32 %v3551_v54, %v986_v28  ;;  %v2565_v28 = vld [vmem:[%s4159_s0 + $0x234] sm:$0xf0] }
 0x34f   :  { %v1241_v45 = vpop.f32.mrf.mxu3  ;;  %4260 = vst [vmem:[#allocation45_spill] sm:$0xff] %v3671_v21  ;;  %v999_v61 = vadd.f32 %v3183_v43, %v3663_v63 }
 0x350   :  { %v1242_v36 = vadd.f32 %v1241_v45, %v1113_v60  ;;  %4261 = vst [vmem:[#allocation46_spill] sm:$0xff] %v3685_v51  ;;  %v2675_v60 = vld [vmem:[%s4159_s0 + $0x22c] sm:$0xf] }
 0x351   :  { %1037 = vmatmul.bf16.gmra.mxu1 %v3671_v21  ;;  %v3698_v24 = vor.u32 %v2675_v60, %v2565_v28 }
 0x352   :  { %v1328_v5 = vmax.f32 %v1242_v36, 0.0 }
 0x353   :  { %v3661_v0 = vpop.f32.mrf.mxu0  ;;  %4262 = vst [vmem:[#allocation47_spill] sm:$0xff] %v3698_v24  ;;  %1171 = vmatmul.bf16.gmra.mxu2 %v3698_v24 }
 0x354   :  { %v1129_v45 = vpop.f32.mrf.mxu2 }
 0x356   :  { %v1000_v50 = vpop.f32.mrf.mxu1 }
 0x357   :  { %v1243_v20 = vpop.f32.mrf.mxu3 }
 0x358   :  { %v1244_v32 = vadd.f32 %v1243_v20, %v1115_v15 }
 0x35a   :  { %v1329_v11 = vmax.f32 %v1244_v32, 0.0 }
 0x35b   :  { %v3687_v40 = vpop.f32.mrf.mxu0 }
 0x35c   :  { %1285 = vmatmul.bf16.gmra.mxu3 %v3685_v51  ;;  %v1365_v58 = vpack.c.bf16 %v1329_v11, %v1328_v5  ;;  %v991_v11 = vadd.f32 %v3183_v43, %v3595_v18  ;;  %v2676_v5 = vld [vmem:[%s4159_s0 + $0x230] sm:$0xf0]  ;;  %v2547_v18 = vld [vmem:[%s4159_s0 + $0x200] sm:$0xf] }
 0x35d   :  { %v3712_v15 = vor.u32 %v2676_v5, %v2563_v31  ;;  %v3724_v31 = vor.u32 %v2671_v8, %v2547_v18  ;;  %v1132_v5 = vpop.f32.mrf.mxu2 }
 0x35e   :  { %1505 = vmatmul.bf16.gmra.mxu0 %v1365_v58  ;;  %v1003_v36 = vpop.f32.mrf.mxu1  ;;  %v1120_v20 = vadd.f32 %v3598_v23, %v991_v11  ;;  %v996_v11 = vadd.f32 %v3183_v43, %v3642_v49 }
 0x35f   :  { %v1246_v54 = vpop.f32.mrf.mxu3  ;;  %4263 = vst [vmem:[#allocation48_spill] sm:$0xff] %v3712_v15 }
 0x360   :  { %v1247_v32 = vadd.f32 %v1246_v54, %v1118_v12  ;;  %4264 = vst [vmem:[#allocation49_spill] sm:$0xff] %v3724_v31  ;;  %v1123_v12 = vadd.f32 %v3634_v39, %v994_v26  ;;  %v1125_v17 = vadd.f32 %v3645_v57, %v996_v11  ;;  %v1128_v57 = vadd.f32 %v3681_v3, %v999_v61 }
 0x361   :  { %1042 = vmatmul.bf16.gmra.mxu1 %v3712_v15 }
 0x362   :  { %v1330_v37 = vmax.f32 %v1247_v32, 0.0 }
 0x363   :  { %v3704_v58 = vpop.f32.mrf.mxu0 }
 0x365   :  { %v1134_v8 = vpop.f32.mrf.mxu2 }
 0x366   :  { %v1005_v54 = vpop.f32.mrf.mxu1 }
 0x367   :  { %v1248_v60 = vpop.f32.mrf.mxu3 }
 0x368   :  { %v1249_v28 = vadd.f32 %v1248_v60, %v1120_v20  ;;  %v2559_v20 = vld [vmem:[%s4159_s0 + $0x218] sm:$0xf] }
 0x36a   :  { %v1331_v51 = vmax.f32 %v1249_v28, 0.0 }
 0x36b   :  { %v3726_v24 = vpop.f32.mrf.mxu0 }
 0x36c   :  { %1290 = vmatmul.bf16.gmra.mxu3 %v3724_v31  ;;  %v1366_v21 = vpack.c.bf16 %v1331_v51, %v1330_v37  ;;  %v2674_v51 = vld [vmem:[%s4159_s0 + $0x220] sm:$0xf0] }
 0x36d   :  { %v3743_v26 = vor.u32 %v2674_v51, %v2559_v20  ;;  %v1137_v15 = vpop.f32.mrf.mxu2  ;;  %v2571_v20 = vld [vmem:[%s4159_s0 + $0x230] sm:$0xf]  ;;  %v2677_v51 = vld [vmem:[%s4159_s0 + $0x238] sm:$0xf0] }
 0x36e   :  { %1510 = vmatmul.bf16.gmra.mxu0 %v1366_v21  ;;  %v1008_v39 = vpop.f32.mrf.mxu1 }
 0x36f   :  { %v1251_v23 = vpop.f32.mrf.mxu3  ;;  %4265 = vst [vmem:[#allocation50_spill] sm:$0xff] %v3743_v26 }
 0x370   :  { %v1252_v21 = vadd.f32 %v1251_v23, %v1123_v12  ;;  %v1001_v23 = vadd.f32 %v3183_v43, %v1000_v50 }
 0x372   :  { %v1332_v49 = vmax.f32 %v1252_v21, 0.0 }
 0x373   :  { %v3734_v18 = vpop.f32.mrf.mxu0 }
 0x375   :  { %v1139_v63 = vpop.f32.mrf.mxu2 }
 0x376   :  { %v1010_v11 = vpop.f32.mrf.mxu1 }
 0x377   :  { %v1253_v37 = vpop.f32.mrf.mxu3 }
 0x378   :  { %v1254_v32 = vadd.f32 %v1253_v37, %v1125_v17  ;;  %v1130_v17 = vadd.f32 %v1129_v45, %v1001_v23 }
 0x37a   :  { %v1333_v60 = vmax.f32 %v1254_v32, 0.0  ;;  %v3758_v32 = vor.u32 %v2677_v51, %v2571_v20 }
 0x37b   :  { %v3745_v28 = vpop.f32.mrf.mxu0 }
 0x37c   :  { %1295 = vmatmul.bf16.gmra.mxu3 %v3743_v26  ;;  %v1367_v31 = vpack.c.bf16 %v1333_v60, %v1332_v49  ;;  %4266 = vst [vmem:[#allocation51_spill] sm:$0xff] %v3758_v32  ;;  %v1004_v26 = vadd.f32 %v3183_v43, %v1003_v36 }
 0x37d   :  { %v1142_v7 = vpop.f32.mrf.mxu2 }
 0x37e   :  { %1515 = vmatmul.bf16.gmra.mxu0 %v1367_v31  ;;  %v1013_v60 = vpop.f32.mrf.mxu1  ;;  %v1133_v2 = vadd.f32 %v1132_v5, %v1004_v26  ;;  %v1011_v5 = vadd.f32 %v3183_v43, %v1010_v11 }
 0x37f   :  { %v1256_v16 = vpop.f32.mrf.mxu3  ;;  %v1014_v11 = vadd.f32 %v3183_v43, %v1013_v60  ;;  %v4267_v60 = vpack.c.bf16 %v3704_v58, %v3687_v40 }
 0x380   :  { %v1257_v21 = vadd.f32 %v1256_v16, %v1128_v57  ;;  %v1006_v16 = vadd.f32 %v3183_v43, %v1005_v54 }
 0x382   :  { %v1334_v61 = vmax.f32 %v1257_v21, 0.0  ;;  %v1135_v57 = vadd.f32 %v1134_v8, %v1006_v16 }
 0x383   :  { %v1478_v12 = vpop.f32.mrf.mxu0 }
 0x386   :  { %v1015_v51 = vpop.f32.mrf.mxu1 }
 0x387   :  { %v1258_v37 = vpop.f32.mrf.mxu3 }
 0x388   :  { %v1259_v31 = vadd.f32 %v1258_v37, %v1130_v17 }
 0x38a   :  { %v1335_v3 = vmax.f32 %v1259_v31, 0.0 }
 0x38b   :  { %v1481_v50 = vpop.f32.mrf.mxu0 }
 0x38c   :  { %1300 = vmatmul.bf16.gmra.mxu3 %v3758_v32  ;;  %v1368_v49 = vpack.c.bf16 %v1335_v3, %v1334_v61  ;;  %v1144_v32 = vpop.f32.mrf.mxu2  ;;  %v1009_v3 = vadd.f32 %v3183_v43, %v1008_v39 }
 0x38e   :  { %1520 = vmatmul.bf16.gmra.mxu0 %v1368_v49  ;;  %v1018_v49 = vpop.f32.mrf.mxu1  ;;  %v1138_v62 = vadd.f32 %v1137_v15, %v1009_v3  ;;  %v1576_v15 = vpack.c.bf16 %v1478_v12, %v3745_v28 }
 0x38f   :  { %v1261_v27 = vpop.f32.mrf.mxu3 }
 0x390   :  { %v1262_v23 = vadd.f32 %v1261_v27, %v1133_v2  ;;  %v1140_v2 = vadd.f32 %v1139_v63, %v1011_v5 }
 0x392   :  { %v1336_v21 = vmax.f32 %v1262_v23, 0.0 }
 0x393   :  { %v1483_v45 = vpop.f32.mrf.mxu0 }
 0x394   :  { %v1147_v8 = vpop.f32.mrf.mxu2  ;;  %v1577_v23 = vpack.c.bf16 %v1483_v45, %v1481_v50  ;;  %v1016_v50 = vadd.f32 %v3183_v43, %v1015_v51 }
 0x396   :  { %v1020_v39 = vpop.f32.mrf.mxu1  ;;  %v1145_v28 = vadd.f32 %v1144_v32, %v1016_v50  ;;  %v4269_v32 = vpack.c.bf16 %v3614_v55, %v3593_v52 }
 0x397   :  { %v1263_v20 = vpop.f32.mrf.mxu3 }
 0x398   :  { %v1264_v17 = vadd.f32 %v1263_v20, %v1135_v57 }
 0x39a   :  { %v1337_v37 = vmax.f32 %v1264_v17, 0.0 }
 0x39b   :  { %v1486_v31 = vpop.f32.mrf.mxu0 }
 0x39c   :  { %v1369_v61 = vpack.c.bf16 %v1337_v37, %v1336_v21  ;;  %v1149_v63 = vpop.f32.mrf.mxu2 }
 0x39e   :  { %1525 = vmatmul.bf16.gmra.mxu0 %v1369_v61  ;;  %v1143_v61 = vadd.f32 %v1142_v7, %v1014_v11 }
 0x39f   :  { %v1266_v36 = vpop.f32.mrf.mxu3 }
 0x3a0   :  { %v1267_v27 = vadd.f32 %v1266_v36, %v1138_v62  ;;  %v1575_v62 = vpack.c.bf16 %v3734_v18, %v3726_v24  ;;  %v1023_v36 = vpop.f32.mrf.mxu1  ;;  %v4268_v18 = vpack.c.bf16 %v3661_v0, %v3640_v46 }
 0x3a2   :  { %v1338_v20 = vmax.f32 %v1267_v27, 0.0  ;;  %v1019_v27 = vadd.f32 %v3183_v43, %v1018_v49 }
 0x3a3   :  { %v1488_v54 = vpop.f32.mrf.mxu0 }
 0x3a4   :  { %v1578_v26 = vpack.c.bf16 %v1488_v54, %v1486_v31 }
 0x3a6   :  { %1599 = vmatpush.bf16.msrb.mxu1 %v1578_v26  ;;  %v1152_v26 = vpop.f32.mrf.mxu2 }
 0x3a7   :  { %v1268_v16 = vpop.f32.mrf.mxu3 }
 0x3a8   :  { %v1269_v57 = vadd.f32 %v1268_v16, %v1140_v2  ;;  %v1025_v58 = vpop.f32.mrf.mxu1  ;;  %v1148_v16 = vadd.f32 %v1147_v8, %v1019_v27 }
 0x3aa   :  { %v1339_v17 = vmax.f32 %v1269_v57, 0.0  ;;  %1600 = vmatpush.bf16.msrb.mxu1 %v1577_v23  ;;  %v1021_v57 = vadd.f32 %v3183_v43, %v1020_v39  ;;  %v4270_v23 = vpack.c.bf16 %v3567_v14, %v3546_v41  ;;  %v1024_v14 = vadd.f32 %v3183_v43, %v1023_v36 }
 0x3ab   :  { %v3765_v21 = vpop.f32.mrf.mxu0 }
 0x3ac   :  { %v1370_v37 = vpack.c.bf16 %v1339_v17, %v1338_v20  ;;  %v1150_v20 = vadd.f32 %v1149_v63, %v1021_v57 }
 0x3ae   :  { %1530 = vmatmul.bf16.gmra.mxu0 %v1370_v37  ;;  %1601 = vmatpush.bf16.msrb.mxu1 %v1576_v15  ;;  %v1154_v0 = vpop.f32.mrf.mxu2 }
 0x3af   :  { %v1271_v31 = vpop.f32.mrf.mxu3 }
 0x3b0   :  { %v1272_v12 = vadd.f32 %v1271_v31, %v1143_v61  ;;  %v1028_v37 = vpop.f32.mrf.mxu1  ;;  %v1026_v61 = vadd.f32 %v3183_v43, %v1025_v58  ;;  %v2718_v43 = vld [vmem:[%s4160_s3] ss:$0 sm:$0xff] }
 0x3b2   :  { %1602 = vmatpush.bf16.msrb.mxu1 %v1575_v62  ;;  %v1340_v24 = vmax.f32 %v1272_v12, 0.0  ;;  %v1153_v62 = vadd.f32 %v1152_v26, %v1024_v14 }
 0x3b3   :  { %v3772_v45 = vpop.f32.mrf.mxu0 }
 0x3b4   :  { %v1579_v3 = vpack.c.bf16 %v3772_v45, %v3765_v21 }
 0x3b6   :  { %1603 = vmatpush.bf16.msrb.mxu1 %v4267_v60  ;;  %v1157_v41 = vpop.f32.mrf.mxu2 }
 0x3b7   :  { %v1273_v5 = vpop.f32.mrf.mxu3 }
 0x3b8   :  { %v1274_v54 = vadd.f32 %v1273_v5, %v1145_v28  ;;  %v1155_v28 = vadd.f32 %v1154_v0, %v1026_v61 }
 0x3ba   :  { %v1341_v7 = vmax.f32 %v1274_v54, 0.0  ;;  %1604 = vmatpush.bf16.msrb.mxu1 %v4268_v18 }
 0x3bb   :  { %v3782_v51 = vpop.f32.mrf.mxu0 }
 0x3bc   :  { %v1371_v2 = vpack.c.bf16 %v1341_v7, %v1340_v24 }
 0x3be   :  { %1535 = vmatmul.bf16.gmra.mxu0 %v1371_v2  ;;  %1605 = vmatpush.bf16.msrb.mxu1 %v4269_v32  ;;  %v1159_v5 = vpop.f32.mrf.mxu2  ;;  %v1029_v2 = vadd.f32 %v2718_v43, %v1028_v37 }
 0x3bf   :  { %v1276_v40 = vpop.f32.mrf.mxu3 }
 0x3c0   :  { %v1277_v52 = vadd.f32 %v1276_v40, %v1148_v16 }
 0x3c2   :  { %1606 = vmatpush.bf16.msrb.mxu1 %v4270_v23  ;;  %v1342_v8 = vmax.f32 %v1277_v52, 0.0 }
 0x3c3   :  { %v3792_v46 = vpop.f32.mrf.mxu0 }
 0x3c4   :  { %v1580_v49 = vpack.c.bf16 %v3792_v46, %v3782_v51 }
 0x3c5   :  { %1607 = vmatmul.bf16.vlgmr.msrb.gmra.mxu1 %v2887_v29  ;;  %v1030_v29 = vpop.f32.mrf.mxu1 }
 0x3c6   :  { %v1162_v32 = vpop.f32.mrf.mxu2  ;;  %v1031_v40 = vadd.f32 %v2718_v43, %v1030_v29 }
 0x3c7   :  { %v1278_v55 = vpop.f32.mrf.mxu3 }
 0x3c8   :  { %v1279_v17 = vadd.f32 %v1278_v55, %v1150_v20  ;;  %v1160_v57 = vadd.f32 %v1159_v5, %v1031_v40 }
 0x3ca   :  { %v1343_v15 = vmax.f32 %v1279_v17, 0.0 }
 0x3cb   :  { %v3797_v39 = vpop.f32.mrf.mxu0 }
 0x3cc   :  { %v1372_v11 = vpack.c.bf16 %v1343_v15, %v1342_v8 }
 0x3cd   :  { %v1033_v18 = vpop.f32.mrf.mxu1 }
 0x3ce   :  { %1540 = vmatmul.bf16.gmra.mxu0 %v1372_v11  ;;  %v1164_v8 = vpop.f32.mrf.mxu2  ;;  %v1034_v11 = vadd.f32 %v2718_v43, %v1033_v18 }
 0x3cf   :  { %v1281_v31 = vpop.f32.mrf.mxu3 }
 0x3d0   :  { %v1282_v12 = vadd.f32 %v1281_v31, %v1153_v62  ;;  %v1163_v31 = vadd.f32 %v1162_v32, %v1034_v11 }
 0x3d2   :  { %v1344_v24 = vmax.f32 %v1282_v12, 0.0 }
 0x3d3   :  { %v3801_v50 = vpop.f32.mrf.mxu0 }
 0x3d4   :  { %v1581_v63 = vpack.c.bf16 %v3801_v50, %v3797_v39 }
 0x3d5   :  { %1612 = vmatmul.bf16.gmra.mxu1 %v2905_v38  ;;  %v1158_v38 = vadd.f32 %v1157_v41, %v1029_v2  ;;  %v1035_v20 = vpop.f32.mrf.mxu1 }
 0x3d6   :  { %v1036_v62 = vadd.f32 %v2718_v43, %v1035_v20  ;;  %v1167_v29 = vpop.f32.mrf.mxu2 }
 0x3d7   :  { %v1283_v60 = vpop.f32.mrf.mxu3 }
 0x3d8   :  { %v1284_v54 = vadd.f32 %v1283_v60, %v1155_v28 }
 0x3da   :  { %v1345_v36 = vmax.f32 %v1284_v54, 0.0 }
 0x3db   :  { %v3806_v7 = vpop.f32.mrf.mxu0 }
 0x3dc   :  { %v1373_v26 = vpack.c.bf16 %v1345_v36, %v1344_v24 }
 0x3dd   :  { %v1038_v14 = vpop.f32.mrf.mxu1 }
 0x3de   :  { %1545 = vmatmul.bf16.gmra.mxu0 %v1373_v26  ;;  %v1039_v2 = vadd.f32 %v2718_v43, %v1038_v14  ;;  %v1169_v18 = vpop.f32.mrf.mxu2 }
 0x3df   :  { %v1286_v27 = vpop.f32.mrf.mxu3 }
 0x3e0   :  { %v1287_v23 = vadd.f32 %v1286_v27, %v1158_v38  ;;  %v1168_v38 = vadd.f32 %v1167_v29, %v1039_v2 }
 0x3e2   :  { %v1346_v55 = vmax.f32 %v1287_v23, 0.0 }
 0x3e3   :  { %v3811_v58 = vpop.f32.mrf.mxu0 }
 0x3e4   :  { %v1582_v16 = vpack.c.bf16 %v3811_v58, %v3806_v7 }
 0x3e5   :  { %1617 = vmatmul.bf16.gmra.mxu1 %v2923_v48  ;;  %v1165_v48 = vadd.f32 %v1164_v8, %v1036_v62  ;;  %v1040_v24 = vpop.f32.mrf.mxu1 }
 0x3e6   :  { %v1041_v32 = vadd.f32 %v2718_v43, %v1040_v24 }
 0x3e7   :  { %v1288_v0 = vpop.f32.mrf.mxu3 }
 0x3e8   :  { %v1289_v52 = vadd.f32 %v1288_v0, %v1160_v57 }
 0x3ea   :  { %v1347_v17 = vmax.f32 %v1289_v52, 0.0  ;;  %v1172_v52 = vpop.f32.mrf.mxu2 }
 0x3eb   :  { %v3816_v37 = vpop.f32.mrf.mxu0 }
 0x3ec   :  { %v1374_v15 = vpack.c.bf16 %v1347_v17, %v1346_v55 }
 0x3ed   :  { %v1043_v57 = vpop.f32.mrf.mxu1 }
 0x3ee   :  { %1550 = vmatmul.bf16.gmra.mxu0 %v1374_v15  ;;  %v1044_v11 = vadd.f32 %v2718_v43, %v1043_v57 }
 0x3ef   :  { %v1291_v41 = vpop.f32.mrf.mxu3 }
 0x3f0   :  { %v1292_v28 = vadd.f32 %v1291_v41, %v1163_v31  ;;  %v1173_v31 = vadd.f32 %v1172_v52, %v1044_v11 }
 0x3f2   :  { %v1348_v5 = vmax.f32 %v1292_v28, 0.0  ;;  %v1174_v29 = vpop.f32.mrf.mxu2 }
 0x3f3   :  { %v1513_v61 = vpop.f32.mrf.mxu0 }
 0x3f5   :  { %1622 = vmatmul.bf16.gmra.mxu1 %v2952_v59  ;;  %v1170_v59 = vadd.f32 %v1169_v18, %v1041_v32  ;;  %v1045_v41 = vpop.f32.mrf.mxu1 }
 0x3f6   :  { %v1046_v62 = vadd.f32 %v2718_v43, %v1045_v41 }
 0x3f7   :  { %v1293_v12 = vpop.f32.mrf.mxu3 }
 0x3f8   :  { %v1294_v60 = vadd.f32 %v1293_v12, %v1165_v48 }
 0x3fa   :  { %v1349_v54 = vmax.f32 %v1294_v60, 0.0 }
 0x3fb   :  { %v1516_v36 = vpop.f32.mrf.mxu0 }
 0x3fc   :  { %v1375_v26 = vpack.c.bf16 %v1349_v54, %v1348_v5 }
 0x3fe   :  { %1555 = vmatmul.bf16.gmra.mxu0 %v1375_v26 }
 0x3ff   :  { %v1296_v27 = vpop.f32.mrf.mxu3 }
 0x400   :  { %v1297_v23 = vadd.f32 %v1296_v27, %v1168_v38 }
 0x402   :  { %v1350_v55 = vmax.f32 %v1297_v23, 0.0 }
 0x403   :  { %v1518_v40 = vpop.f32.mrf.mxu0 }
 0x404   :  { %v1584_v38 = vpack.c.bf16 %v1518_v40, %v1516_v36  ;;  %v4278_v36 = vld [vmem:[#allocation6_spill] sm:$0xff] }
 0x405   :  { %1627 = vmatmul.bf16.gmra.mxu1 %v2979_v4  ;;  %v1175_v4 = vadd.f32 %v1174_v29, %v1046_v62  ;;  %v4282_v29 = vld [vmem:[#allocation18_spill] sm:$0xff] }
 0x407   :  { %v1298_v0 = vpop.f32.mrf.mxu3 }
 0x408   :  { %v1299_v20 = vadd.f32 %v1298_v0, %v1170_v59 }
 0x40a   :  { %v1351_v17 = vmax.f32 %v1299_v20, 0.0  ;;  %v4279_v20 = vld [vmem:[#allocation15_spill] sm:$0xff] }
 0x40b   :  { %v1521_v8 = vpop.f32.mrf.mxu0 }
 0x40c   :  { %v1376_v15 = vpack.c.bf16 %v1351_v17, %v1350_v55  ;;  %v4280_v55 = vld [vmem:[#allocation7_spill] sm:$0xff] }
 0x40e   :  { %1560 = vmatmul.bf16.gmra.mxu0 %v1376_v15 }
 0x40f   :  { %v1301_v14 = vpop.f32.mrf.mxu3 }
 0x410   :  { %v1302_v28 = vadd.f32 %v1301_v14, %v1173_v31 }
 0x412   :  { %v1352_v5 = vmax.f32 %v1302_v28, 0.0 }
 0x413   :  { %v1523_v48 = vpop.f32.mrf.mxu0 }
 0x414   :  { %v1585_v27 = vpack.c.bf16 %v1523_v48, %v1521_v8  ;;  %v4281_v8 = vld [vmem:[#allocation14_spill] sm:$0xff] }
 0x415   :  { %1632 = vmatmul.bf16.gmra.mxu1 %v3006_v13  ;;  %v1583_v13 = vpack.c.bf16 %v1513_v61, %v3816_v37 }
 0x417   :  { %v1303_v12 = vpop.f32.mrf.mxu3 }
 0x418   :  { %v1304_v60 = vadd.f32 %v1303_v12, %v1175_v4  ;;  %v4283_v4 = vld [vmem:[#allocation9_spill] sm:$0xff] }
 0x419   :  { %v4284_v12 = vld [vmem:[#allocation17_spill] sm:$0xff] }
 0x41a   :  { %v1353_v54 = vmax.f32 %v1304_v60, 0.0 }
 0x41b   :  { %v1526_v24 = vpop.f32.mrf.mxu0 }
 0x41c   :  { %v1377_v26 = vpack.c.bf16 %v1353_v54, %v1352_v5 }
 0x41e   :  { %1565 = vmatmul.bf16.gmra.mxu0 %v1377_v26 }
 0x423   :  { %v1528_v2 = vpop.f32.mrf.mxu0 }
 0x424   :  { %v1586_v18 = vpack.c.bf16 %v1528_v2, %v1526_v24 }
 0x425   :  { %1637 = vmatmul.bf16.gmra.mxu1 %v3033_v22 }
 0x426   :  { %1728 = vmatpush.bf16.msrb.mxu2 %v1586_v18  ;;  %v4285_v18 = vld [vmem:[#allocation21_spill] sm:$0xff] }
 0x42a   :  { %1729 = vmatpush.bf16.msrb.mxu2 %v1585_v27 }
 0x42b   :  { %v1531_v43 = vpop.f32.mrf.mxu0 }
 0x42e   :  { %1730 = vmatpush.bf16.msrb.mxu2 %v1584_v38 }
 0x432   :  { %1731 = vmatpush.bf16.msrb.mxu2 %v1583_v13  ;;  %v4287_v13 = vld [vmem:[#allocation20_spill] sm:$0xff] }
 0x433   :  { %v1533_v32 = vpop.f32.mrf.mxu0 }
 0x434   :  { %v1587_v57 = vpack.c.bf16 %v1533_v32, %v1531_v43  ;;  %v4286_v43 = vld [vmem:[#allocation11_spill] sm:$0xff] }
 0x435   :  { %1642 = vmatmul.bf16.gmra.mxu1 %v3060_v33 }
 0x436   :  { %1732 = vmatpush.bf16.msrb.mxu2 %v1582_v16  ;;  %v4276_v16 = vld [vmem:[#allocation12_spill] sm:$0xff] }
 0x43a   :  { %1733 = vmatpush.bf16.msrb.mxu2 %v1581_v63  ;;  %v4275_v63 = vld [vmem:[#allocation4_spill] sm:$0xff] }
 0x43b   :  { %v1536_v22 = vpop.f32.mrf.mxu0 }
 0x43e   :  { %1734 = vmatpush.bf16.msrb.mxu2 %v1580_v49 }
 0x442   :  { %1735 = vmatpush.bf16.msrb.mxu2 %v1579_v3 }
 0x443   :  { %v1538_v37 = vpop.f32.mrf.mxu0 }
 0x444   :  { %v1588_v61 = vpack.c.bf16 %v1538_v37, %v1536_v22 }
 0x445   :  { %1736 = vmatmul.bf16.vlgmr.msrb.gmra.mxu2 %v2878_v25  ;;  %1647 = vmatmul.bf16.gmra.mxu1 %v3093_v47 }
 0x44b   :  { %v1541_v33 = vpop.f32.mrf.mxu0 }
 0x453   :  { %v1543_v7 = vpop.f32.mrf.mxu0 }
 0x454   :  { %v1589_v58 = vpack.c.bf16 %v1543_v7, %v1541_v33 }
 0x455   :  { %1741 = vmatmul.bf16.gmra.mxu2 %v2896_v34  ;;  %1652 = vmatmul.bf16.gmra.mxu1 %v3132_v9 }
 0x45b   :  { %v1546_v39 = vpop.f32.mrf.mxu0 }
 0x463   :  { %v1548_v51 = vpop.f32.mrf.mxu0 }
 0x464   :  { %v1590_v46 = vpack.c.bf16 %v1548_v51, %v1546_v39 }
 0x465   :  { %1746 = vmatmul.bf16.gmra.mxu2 %v2914_v44  ;;  %1657 = vmatmul.bf16.gmra.mxu1 %v3167_v35 }
 0x46b   :  { %v1551_v21 = vpop.f32.mrf.mxu0 }
 0x473   :  { %v1553_v45 = vpop.f32.mrf.mxu0 }
 0x475   :  { %1751 = vmatmul.bf16.gmra.mxu2 %v2943_v56  ;;  %1662 = vmatmul.bf16.gmra.mxu1 %v3209_v6  ;;  %v1591_v56 = vpack.c.bf16 %v1553_v45, %v1551_v21  ;;  %v4274_v6 = vld [vmem:[#allocation10_spill] sm:$0xff]  ;;  %v4289_v45 = vld [vmem:[#allocation13_spill] sm:$0xff] }
 0x47b   :  { %v1556_v25 = vpop.f32.mrf.mxu0 }
 0x483   :  { %v1558_v47 = vpop.f32.mrf.mxu0 }
 0x484   :  { %v1592_v35 = vpack.c.bf16 %v1558_v47, %v1556_v25  ;;  %v4290_v47 = vld [vmem:[#allocation23_spill] sm:$0xff] }
 0x485   :  { %1756 = vmatmul.bf16.gmra.mxu2 %v2970_v1  ;;  %v4271_v1 = vld [vmem:[#allocation2_spill] sm:$0xff] }
 0x48b   :  { %v1561_v34 = vpop.f32.mrf.mxu0 }
 0x493   :  { %v1563_v3 = vpop.f32.mrf.mxu0 }
 0x494   :  { %v1593_v44 = vpack.c.bf16 %v1563_v3, %v1561_v34 }
 0x495   :  { %1761 = vmatmul.bf16.gmra.mxu2 %v2997_v10  ;;  %v4272_v10 = vld [vmem:[#allocation8_spill] sm:$0xff] }
 0x49b   :  { %v1566_v9 = vpop.f32.mrf.mxu0 }
 0x4a3   :  { %v1568_v49 = vpop.f32.mrf.mxu0 }
 0x4a4   :  { %v1594_v50 = vpack.c.bf16 %v1568_v49, %v1566_v9 }
 0x4a5   :  { %1766 = vmatmul.bf16.gmra.mxu2 %v3024_v19  ;;  %v4273_v19 = vld [vmem:[#allocation3_spill] sm:$0xff] }
 0x4a6   :  { %1857 = vmatpush.bf16.msrb.mxu3 %v1594_v50 }
 0x4aa   :  { %1858 = vmatpush.bf16.msrb.mxu3 %v1593_v44 }
 0x4ae   :  { %1859 = vmatpush.bf16.msrb.mxu3 %v1592_v35 }
 0x4b2   :  { %1860 = vmatpush.bf16.msrb.mxu3 %v1591_v56 }
 0x4b5   :  { %1771 = vmatmul.bf16.gmra.mxu2 %v3051_v30  ;;  %v4277_v30 = vld [vmem:[#allocation5_spill] sm:$0xff] }
 0x4b6   :  { %1861 = vmatpush.bf16.msrb.mxu3 %v1590_v46  ;;  %v4288_v46 = vld [vmem:[#allocation24_spill] sm:$0xff] }
 0x4ba   :  { %1862 = vmatpush.bf16.msrb.mxu3 %v1589_v58 }
 0x4be   :  { %1863 = vmatpush.bf16.msrb.mxu3 %v1588_v61 }
 0x4c2   :  { %1864 = vmatpush.bf16.msrb.mxu3 %v1587_v57 }
 0x4c5   :  { %1865 = vmatmul.bf16.vlgmr.msrb.gmra.mxu3 %v2934_v53  ;;  %1776 = vmatmul.bf16.gmra.mxu2 %v3081_v42  ;;  %v3861_v53 = vld [vmem:[%s4162_s5] ss:$0 sm:$0xff]  ;;  %v1608_v42 = vpop.f32.mrf.mxu1 }
 0x4c6   :  { %v1609_v40 = vadd.f32 %v3861_v53, %v1608_v42 }
 0x4c8   :  { %v1737_v59 = vpop.f32.mrf.mxu2 }
 0x4c9   :  { %v1738_v23 = vadd.f32 %v1737_v59, %v1609_v40 }
 0x4cd   :  { %v1610_v0 = vpop.f32.mrf.mxu1  ;;  %1667 = vmatmul.bf16.gmra.mxu1 %v4279_v20 }
 0x4ce   :  { %v1611_v52 = vadd.f32 %v3861_v53, %v1610_v0 }
 0x4d0   :  { %v1739_v17 = vpop.f32.mrf.mxu2 }
 0x4d1   :  { %v1740_v15 = vadd.f32 %v1739_v17, %v1611_v52 }
 0x4d5   :  { %1870 = vmatmul.bf16.gmra.mxu3 %v4271_v1  ;;  %1781 = vmatmul.bf16.gmra.mxu2 %v4272_v10  ;;  %v1613_v11 = vpop.f32.mrf.mxu1 }
 0x4d6   :  { %v1614_v41 = vadd.f32 %v3861_v53, %v1613_v11  ;;  %v4295_v11 = vld [vmem:[#allocation19_spill] sm:$0xff] }
 0x4d8   :  { %v1742_v14 = vpop.f32.mrf.mxu2 }
 0x4d9   :  { %v1743_v31 = vadd.f32 %v1742_v14, %v1614_v41  ;;  %v4296_v14 = vld [vmem:[#allocation29_spill] sm:$0xff] }
 0x4dd   :  { %v1615_v62 = vpop.f32.mrf.mxu1  ;;  %1672 = vmatmul.bf16.gmra.mxu1 %v4282_v29 }
 0x4de   :  { %v1616_v48 = vadd.f32 %v3861_v53, %v1615_v62 }
 0x4e0   :  { %v1744_v28 = vpop.f32.mrf.mxu2 }
 0x4e1   :  { %v1745_v60 = vadd.f32 %v1744_v28, %v1616_v48 }
 0x4e5   :  { %1875 = vmatmul.bf16.gmra.mxu3 %v4273_v19  ;;  %1786 = vmatmul.bf16.gmra.mxu2 %v4274_v6  ;;  %v1618_v5 = vpop.f32.mrf.mxu1  ;;  %v4291_v19 = vld [vmem:[#allocation27_spill] sm:$0xff] }
 0x4e6   :  { %v1619_v54 = vadd.f32 %v3861_v53, %v1618_v5 }
 0x4e8   :  { %v1747_v24 = vpop.f32.mrf.mxu2 }
 0x4e9   :  { %v1748_v26 = vadd.f32 %v1747_v24, %v1619_v54  ;;  %v4297_v24 = vld [vmem:[#allocation33_spill] sm:$0xff] }
 0x4ed   :  { %v1620_v2 = vpop.f32.mrf.mxu1  ;;  %1677 = vmatmul.bf16.gmra.mxu1 %v4285_v18  ;;  %v4299_v18 = vld [vmem:[#allocation32_spill] sm:$0xff] }
 0x4ee   :  { %v1621_v27 = vadd.f32 %v3861_v53, %v1620_v2 }
 0x4f0   :  { %v1749_v38 = vpop.f32.mrf.mxu2 }
 0x4f1   :  { %v1750_v32 = vadd.f32 %v1749_v38, %v1621_v27 }
 0x4f5   :  { %1880 = vmatmul.bf16.gmra.mxu3 %v4275_v63  ;;  %1791 = vmatmul.bf16.gmra.mxu2 %v4276_v16  ;;  %v1623_v37 = vpop.f32.mrf.mxu1  ;;  %v4292_v63 = vld [vmem:[#allocation16_spill] sm:$0xff] }
 0x4f6   :  { %v1624_v61 = vadd.f32 %v3861_v53, %v1623_v37  ;;  %v4300_v37 = vld [vmem:[#allocation36_spill] sm:$0xff] }
 0x4f8   :  { %v1752_v33 = vpop.f32.mrf.mxu2 }
 0x4f9   :  { %v1753_v7 = vadd.f32 %v1752_v33, %v1624_v61  ;;  %v4301_v61 = vld [vmem:[#allocation25_spill] sm:$0xff] }
 0x4fd   :  { %v1625_v51 = vpop.f32.mrf.mxu1  ;;  %1682 = vmatmul.bf16.gmra.mxu1 %v4288_v46 }
 0x4fe   :  { %v1626_v21 = vadd.f32 %v3861_v53, %v1625_v51 }
 0x500   :  { %v1754_v25 = vpop.f32.mrf.mxu2 }
 0x501   :  { %v1755_v34 = vadd.f32 %v1754_v25, %v1626_v21 }
 0x505   :  { %1885 = vmatmul.bf16.gmra.mxu3 %v4277_v30  ;;  %1796 = vmatmul.bf16.gmra.mxu2 %v4281_v8  ;;  %v1628_v49 = vpop.f32.mrf.mxu1  ;;  %v4293_v30 = vld [vmem:[#allocation26_spill] sm:$0xff] }
 0x506   :  { %v1629_v50 = vadd.f32 %v3861_v53, %v1628_v49  ;;  %v4294_v8 = vld [vmem:[#allocation30_spill] sm:$0xff]  ;;  %v4304_v49 = vld [vmem:[#allocation28_spill] sm:$0xff] }
 0x508   :  { %v1757_v44 = vpop.f32.mrf.mxu2 }
 0x509   :  { %v1758_v35 = vadd.f32 %v1757_v44, %v1629_v50  ;;  %v4305_v44 = vld [vmem:[#allocation38_spill] sm:$0xff] }
 0x50d   :  { %v1630_v10 = vpop.f32.mrf.mxu1  ;;  %1687 = vmatmul.bf16.gmra.mxu1 %v4291_v19 }
 0x50e   :  { %v1631_v6 = vadd.f32 %v3861_v53, %v1630_v10 }
 0x510   :  { %v1759_v16 = vpop.f32.mrf.mxu2 }
 0x515   :  { %1890 = vmatmul.bf16.gmra.mxu3 %v4278_v36  ;;  %1801 = vmatmul.bf16.gmra.mxu2 %v4284_v12  ;;  %v3896_v36 = vadd.f32 %v1759_v16, %v1631_v6  ;;  %v1633_v59 = vpop.f32.mrf.mxu1 }
 0x518   :  { %v1762_v0 = vpop.f32.mrf.mxu2 }
 0x51d   :  { %v1635_v17 = vpop.f32.mrf.mxu1  ;;  %1692 = vmatmul.bf16.gmra.mxu1 %v4294_v8 }
 0x520   :  { %v1764_v41 = vpop.f32.mrf.mxu2 }
 0x525   :  { %1895 = vmatmul.bf16.gmra.mxu3 %v4280_v55  ;;  %1806 = vmatmul.bf16.gmra.mxu2 %v4287_v13  ;;  %v1638_v48 = vpop.f32.mrf.mxu1 }
 0x528   :  { %v1767_v28 = vpop.f32.mrf.mxu2 }
 0x52d   :  { %v1640_v54 = vpop.f32.mrf.mxu1  ;;  %1697 = vmatmul.bf16.gmra.mxu1 %v4297_v24 }
 0x530   :  { %v1769_v2 = vpop.f32.mrf.mxu2 }
 0x535   :  { %1900 = vmatmul.bf16.gmra.mxu3 %v4283_v4  ;;  %1811 = vmatmul.bf16.gmra.mxu2 %v4290_v47  ;;  %v1639_v4 = vadd.f32 %v3861_v53, %v1638_v48  ;;  %v1643_v38 = vpop.f32.mrf.mxu1 }
 0x537   :  { %v3914_v12 = vadd.f32 %v1767_v28, %v1639_v4 }
 0x538   :  { %v1772_v13 = vpop.f32.mrf.mxu2 }
 0x540   :  { %v1774_v33 = vpop.f32.mrf.mxu2 }
 0x545   :  { %1905 = vmatmul.bf16.gmra.mxu3 %v4286_v43  ;;  %1816 = vmatmul.bf16.gmra.mxu2 %v4293_v30 }
 0x548   :  { %v1866_v57 = vpop.f32.mrf.mxu3  ;;  %v1777_v21 = vpop.f32.mrf.mxu2 }
 0x549   :  { %v3878_v22 = vadd.f32 %v1866_v57, %v1738_v23  ;;  %v1634_v23 = vadd.f32 %v3861_v53, %v1633_v59  ;;  %v1645_v57 = vpop.f32.mrf.mxu1  ;;  %1702 = vmatmul.bf16.gmra.mxu1 %v4300_v37 }
 0x54b   :  { %v3901_v20 = vadd.f32 %v1762_v0, %v1634_v23  ;;  %v4307_v23 = vld [vmem:[#allocation31_spill] sm:$0xff] }
 0x550   :  { %v1868_v58 = vpop.f32.mrf.mxu3  ;;  %v1779_v50 = vpop.f32.mrf.mxu2 }
 0x551   :  { %v3881_v39 = vadd.f32 %v1868_v58, %v1740_v15  ;;  %v1636_v15 = vadd.f32 %v3861_v53, %v1635_v17  ;;  %v1648_v51 = vpop.f32.mrf.mxu1 }
 0x552   :  { %v1649_v46 = vadd.f32 %v3861_v53, %v1648_v51 }
 0x555   :  { %1910 = vmatmul.bf16.gmra.mxu3 %v4289_v45  ;;  %1821 = vmatmul.bf16.gmra.mxu2 %v4296_v14  ;;  %v1778_v45 = vadd.f32 %v1777_v21, %v1649_v46 }
 0x558   :  { %v1871_v3 = vpop.f32.mrf.mxu3  ;;  %v1782_v6 = vpop.f32.mrf.mxu2 }
 0x559   :  { %v3887_v9 = vadd.f32 %v1871_v3, %v1743_v31  ;;  %v3909_v31 = vadd.f32 %v1764_v41, %v1636_v15  ;;  %v1650_v47 = vpop.f32.mrf.mxu1  ;;  %v1644_v15 = vadd.f32 %v3861_v53, %v1643_v38  ;;  %v4309_v38 = vld [vmem:[#allocation45_spill] sm:$0xff] }
 0x55a   :  { %v1651_v3 = vadd.f32 %v3861_v53, %v1650_v47 }
 0x55b   :  { %v1773_v48 = vadd.f32 %v1772_v13, %v1644_v15 }
 0x560   :  { %v1873_v56 = vpop.f32.mrf.mxu3  ;;  %v1784_v0 = vpop.f32.mrf.mxu2 }
 0x561   :  { %v3890_v1 = vadd.f32 %v1873_v56, %v1745_v60  ;;  %v1653_v10 = vpop.f32.mrf.mxu1 }
 0x562   :  { %v1654_v19 = vadd.f32 %v3861_v53, %v1653_v10 }
 0x563   :  { %v1989_v15 = vmax.f32 %v3890_v1, 0.0 }
 0x565   :  { %1915 = vmatmul.bf16.gmra.mxu3 %v4292_v63  ;;  %1826 = vmatmul.bf16.gmra.mxu2 %v4299_v18  ;;  %v3934_v63 = vadd.f32 %v1782_v6, %v1654_v19 }
 0x568   :  { %v1876_v42 = vpop.f32.mrf.mxu3  ;;  %v1787_v4 = vpop.f32.mrf.mxu2 }
 0x569   :  { %v3898_v40 = vadd.f32 %v1876_v42, %v1748_v26  ;;  %v4298_v26 = vld [vmem:[#allocation22_spill] sm:$0xff]  ;;  %v1655_v30 = vpop.f32.mrf.mxu1 }
 0x56a   :  { %v4306_v42 = vld [vmem:[#allocation42_spill] sm:$0xff]  ;;  %v1656_v59 = vadd.f32 %v3861_v53, %v1655_v30 }
 0x56c   :  { %v3940_v17 = vadd.f32 %v1784_v0, %v1656_v59  ;;  %v4313_v59 = vld [vmem:[#allocation37_spill] sm:$0xff] }
 0x570   :  { %v1878_v52 = vpop.f32.mrf.mxu3  ;;  %v1789_v13 = vpop.f32.mrf.mxu2 }
 0x571   :  { %v3903_v55 = vadd.f32 %v1878_v52, %v1750_v32  ;;  %v4308_v52 = vld [vmem:[#allocation41_spill] sm:$0xff]  ;;  %v1658_v41 = vpop.f32.mrf.mxu1 }
 0x572   :  { %v1659_v14 = vadd.f32 %v3861_v53, %v1658_v41 }
 0x574   :  { %v3946_v28 = vadd.f32 %v1787_v4, %v1659_v14 }
 0x575   :  { %1920 = vmatmul.bf16.gmra.mxu3 %v4295_v11  ;;  %v1646_v11 = vadd.f32 %v3861_v53, %v1645_v57 }
 0x578   :  { %v1881_v62 = vpop.f32.mrf.mxu3 }
 0x579   :  { %v3911_v29 = vadd.f32 %v1881_v62, %v1753_v7  ;;  %v4302_v7 = vld [vmem:[#allocation35_spill] sm:$0xff]  ;;  %v1641_v62 = vadd.f32 %v3861_v53, %v1640_v54  ;;  %v4310_v54 = vld [vmem:[#allocation34_spill] sm:$0xff] }
 0x57a   :  { %1831 = vmatmul.bf16.gmra.mxu2 %v4302_v7  ;;  %v1660_v7 = vpop.f32.mrf.mxu1 }
 0x57b   :  { %v1661_v57 = vadd.f32 %v3861_v53, %v1660_v7 }
 0x57d   :  { %v3952_v21 = vadd.f32 %v1789_v13, %v1661_v57 }
 0x580   :  { %v1883_v60 = vpop.f32.mrf.mxu3 }
 0x581   :  { %v3916_v5 = vadd.f32 %v1883_v60, %v1755_v34  ;;  %v4303_v34 = vld [vmem:[#allocation39_spill] sm:$0xff]  ;;  %v1775_v60 = vadd.f32 %v1774_v33, %v1646_v11  ;;  %v4311_v33 = vld [vmem:[#allocation44_spill] sm:$0xff]  ;;  %v1988_v11 = vmax.f32 %v3887_v9, 0.0 }
 0x582   :  { %1707 = vmatmul.bf16.gmra.mxu1 %v4303_v34 }
 0x585   :  { %1925 = vmatmul.bf16.gmra.mxu3 %v4298_v26  ;;  %v1770_v26 = vadd.f32 %v1769_v2, %v1641_v62  ;;  %v4315_v62 = vld [vmem:[#allocation40_spill] sm:$0xff] }
 0x588   :  { %v1886_v27 = vpop.f32.mrf.mxu3 }
 0x589   :  { %v3921_v43 = vadd.f32 %v1886_v27, %v1758_v35  ;;  %v1780_v35 = vadd.f32 %v1779_v50, %v1651_v3 }
 0x58a   :  { %1836 = vmatmul.bf16.gmra.mxu2 %v4305_v44 }
 0x590   :  { %v3923_v32 = vpop.f32.mrf.mxu3 }
 0x592   :  { %1712 = vmatmul.bf16.gmra.mxu1 %v4306_v42  ;;  %v1992_v42 = vmax.f32 %v3911_v29, 0.0 }
 0x595   :  { %1930 = vmatmul.bf16.gmra.mxu3 %v4301_v61 }
 0x598   :  { %v1891_v58 = vpop.f32.mrf.mxu3 }
 0x599   :  { %v1892_v3 = vadd.f32 %v1891_v58, %v3901_v20  ;;  %v1994_v20 = vmax.f32 %v3921_v43, 0.0  ;;  %v1991_v43 = vmax.f32 %v3903_v55, 0.0  ;;  %v1987_v55 = vmax.f32 %v3881_v39, 0.0 }
 0x59a   :  { %1841 = vmatmul.bf16.gmra.mxu2 %v4308_v52  ;;  %v4314_v52 = vld [vmem:[#allocation47_spill] sm:$0xff] }
 0x59b   :  { %v1996_v19 = vmax.f32 %v1892_v3, 0.0 }
 0x5a0   :  { %v1893_v25 = vpop.f32.mrf.mxu3 }
 0x5a1   :  { %v1894_v2 = vadd.f32 %v1893_v25, %v3909_v31  ;;  %v1792_v31 = vpop.f32.mrf.mxu2 }
 0x5a2   :  { %1717 = vmatmul.bf16.gmra.mxu1 %v4309_v38 }
 0x5a3   :  { %v1997_v44 = vmax.f32 %v1894_v2, 0.0 }
 0x5a5   :  { %1935 = vmatmul.bf16.gmra.mxu3 %v4304_v49 }
 0x5a8   :  { %v1896_v56 = vpop.f32.mrf.mxu3 }
 0x5a9   :  { %v1897_v51 = vadd.f32 %v1896_v56, %v3914_v12  ;;  %v1889_v12 = vadd.f32 %v3923_v32, %v3896_v36  ;;  %v1663_v56 = vpop.f32.mrf.mxu1  ;;  %v4312_v32 = vld [vmem:[#allocation48_spill] sm:$0xff] }
 0x5aa   :  { %1846 = vmatmul.bf16.gmra.mxu2 %v4311_v33  ;;  %v1664_v10 = vadd.f32 %v3861_v53, %v1663_v56 }
 0x5ab   :  { %v1998_v49 = vmax.f32 %v1897_v51, 0.0  ;;  %v1995_v6 = vmax.f32 %v1889_v12, 0.0  ;;  %v4317_v51 = vld [vmem:[#allocation46_spill] sm:$0xff] }
 0x5ac   :  { %v1793_v25 = vadd.f32 %v1792_v31, %v1664_v10 }
 0x5b0   :  { %v1898_v16 = vpop.f32.mrf.mxu3 }
 0x5b1   :  { %v1899_v37 = vadd.f32 %v1898_v16, %v1770_v26  ;;  %v1665_v36 = vpop.f32.mrf.mxu1  ;;  %v4316_v26 = vld [vmem:[#allocation43_spill] sm:$0xff] }
 0x5b2   :  { %1722 = vmatmul.bf16.gmra.mxu1 %v4312_v32  ;;  %v1666_v30 = vadd.f32 %v3861_v53, %v1665_v36 }
 0x5b3   :  { %v1999_v47 = vmax.f32 %v1899_v37, 0.0 }
 0x5b5   :  { %1940 = vmatmul.bf16.gmra.mxu3 %v4307_v23  ;;  %v1794_v23 = vpop.f32.mrf.mxu2 }
 0x5b6   :  { %v1795_v0 = vadd.f32 %v1794_v23, %v1666_v30 }
 0x5b8   :  { %v1901_v8 = vpop.f32.mrf.mxu3 }
 0x5b9   :  { %v1902_v18 = vadd.f32 %v1901_v8, %v1773_v48  ;;  %v3977_v29 = vpop.f32.mrf.mxu1 }
 0x5ba   :  { %1851 = vmatmul.bf16.gmra.mxu2 %v4314_v52 }
 0x5bb   :  { %v2000_v46 = vmax.f32 %v1902_v18, 0.0 }
 0x5bd   :  { %v3980_v41 = vpop.f32.mrf.mxu2 }
 0x5c0   :  { %v1903_v24 = vpop.f32.mrf.mxu3 }
 0x5c1   :  { %v1904_v27 = vadd.f32 %v1903_v24, %v1775_v60  ;;  %v3987_v1 = vpop.f32.mrf.mxu1 }
 0x5c3   :  { %v2001_v61 = vmax.f32 %v1904_v27, 0.0 }
 0x5c5   :  { %1945 = vmatmul.bf16.gmra.mxu3 %v4310_v54  ;;  %2037 = vmatpush.msra.mxu0 %v2001_v61  ;;  %v3990_v48 = vpop.f32.mrf.mxu2 }
 0x5c7   :  { %2038 = vmatpush.msra.mxu0 %v2000_v46 }
 0x5c8   :  { %v1906_v34 = vpop.f32.mrf.mxu3 }
 0x5c9   :  { %v3957_v50 = vadd.f32 %v1906_v34, %v1778_v45  ;;  %2039 = vmatpush.msra.mxu0 %v1999_v47  ;;  %v1993_v45 = vmax.f32 %v3916_v5, 0.0  ;;  %v1990_v5 = vmax.f32 %v3898_v40, 0.0  ;;  %v1986_v40 = vmax.f32 %v3878_v22, 0.0  ;;  %v1673_v39 = vpop.f32.mrf.mxu1  ;;  %v4318_v47 = vld [vmem:[#allocation49_spill] sm:$0xff] }
 0x5cb   :  { %2040 = vmatpush.msra.mxu0 %v1998_v49 }
 0x5cd   :  { %2041 = vmatpush.msra.mxu0 %v1997_v44  ;;  %v3995_v60 = vpop.f32.mrf.mxu2 }
 0x5cf   :  { %2042 = vmatpush.msra.mxu0 %v1996_v19 }
 0x5d0   :  { %v1908_v16 = vpop.f32.mrf.mxu3 }
 0x5d1   :  { %v3963_v58 = vadd.f32 %v1908_v16, %v1780_v35  ;;  %2043 = vmatpush.msra.mxu0 %v1995_v6 }
 0x5d3   :  { %2044 = vmatpush.msra.mxu0 %v1994_v20 }
 0x5d5   :  { %1950 = vmatmul.bf16.gmra.mxu3 %v4313_v59  ;;  %2045 = vmatpush.msra.mxu0 %v1993_v45  ;;  %v4001_v18 = vpop.f32.mrf.mxu2 }
 0x5d7   :  { %2046 = vmatpush.msra.mxu0 %v1992_v42 }
 0x5d8   :  { %v1911_v35 = vpop.f32.mrf.mxu3 }
 0x5d9   :  { %v3974_v8 = vadd.f32 %v1911_v35, %v3934_v63  ;;  %2047 = vmatpush.msra.mxu0 %v1991_v43 }
 0x5db   :  { %2048 = vmatpush.msra.mxu0 %v1990_v5 }
 0x5dd   :  { %2049 = vmatpush.msra.mxu0 %v1989_v15  ;;  %v1807_v7 = vpop.f32.mrf.mxu2 }
 0x5df   :  { %2050 = vmatpush.msra.mxu0 %v1988_v11 }
 0x5e0   :  { %v1913_v14 = vpop.f32.mrf.mxu3 }
 0x5e1   :  { %v3985_v63 = vadd.f32 %v1913_v14, %v3940_v17  ;;  %2051 = vmatpush.msra.mxu0 %v1987_v55  ;;  %v1675_v17 = vpop.f32.mrf.mxu1 }
 0x5e3   :  { %2052 = vmatpush.msra.mxu0 %v1986_v40 }
 0x5e5   :  { %1955 = vmatmul.bf16.gmra.mxu3 %v4315_v62  ;;  %v1809_v46 = vpop.f32.mrf.mxu2 }
 0x5e8   :  { %v1916_v9 = vpop.f32.mrf.mxu3 }
 0x5e9   :  { %v3993_v4 = vadd.f32 %v1916_v9, %v3946_v28  ;;  %v1678_v61 = vpop.f32.mrf.mxu1 }
 0x5ea   :  { %v1679_v14 = vadd.f32 %v3861_v53, %v1678_v61  ;;  %v1669_v61 = vadd.f32 %v3861_v53, %v3977_v29 }
 0x5f0   :  { %v1918_v24 = vpop.f32.mrf.mxu3 }
 0x5f1   :  { %v3998_v22 = vadd.f32 %v1918_v24, %v3952_v21  ;;  %v1680_v57 = vpop.f32.mrf.mxu1  ;;  %v1812_v21 = vpop.f32.mrf.mxu2 }
 0x5f2   :  { %v1681_v40 = vadd.f32 %v3861_v53, %v1680_v57  ;;  %v1671_v57 = vadd.f32 %v3861_v53, %v3987_v1 }
 0x5f5   :  { %1960 = vmatmul.bf16.gmra.mxu3 %v4316_v26 }
 0x5f8   :  { %v1921_v27 = vpop.f32.mrf.mxu3 }
 0x5f9   :  { %v4003_v37 = vadd.f32 %v1921_v27, %v1793_v25  ;;  %v1683_v13 = vpop.f32.mrf.mxu1  ;;  %v1814_v34 = vpop.f32.mrf.mxu2  ;;  %v4319_v25 = vld [vmem:[#allocation50_spill] sm:$0xff]  ;;  %v1674_v27 = vadd.f32 %v3861_v53, %v1673_v39 }
 0x5fa   :  { %v1684_v5 = vadd.f32 %v3861_v53, %v1683_v13  ;;  %v1808_v13 = vadd.f32 %v1807_v7, %v1679_v14 }
 0x5fb   :  { %v1803_v39 = vadd.f32 %v3995_v60, %v1674_v27 }
 0x5fc   :  { %v1813_v62 = vadd.f32 %v1812_v21, %v1684_v5 }
 0x600   :  { %v1923_v38 = vpop.f32.mrf.mxu3 }
 0x601   :  { %v4005_v28 = vadd.f32 %v1923_v38, %v1795_v0  ;;  %v1685_v2 = vpop.f32.mrf.mxu1  ;;  %v1817_v44 = vpop.f32.mrf.mxu2  ;;  %v4320_v0 = vld [vmem:[#allocation51_spill] sm:$0xff]  ;;  %v1676_v38 = vadd.f32 %v3861_v53, %v1675_v17 }
 0x602   :  { %v1686_v15 = vadd.f32 %v3861_v53, %v1685_v2 }
 0x603   :  { %v1805_v17 = vadd.f32 %v4001_v18, %v1676_v38 }
 0x604   :  { %v1815_v26 = vadd.f32 %v1814_v34, %v1686_v15 }
 0x605   :  { %1965 = vmatmul.bf16.gmra.mxu3 %v4317_v51 }
 0x608   :  { %v4008_v54 = vpop.f32.mrf.mxu3 }
 0x609   :  { %v1688_v49 = vpop.f32.mrf.mxu1  ;;  %v1819_v6 = vpop.f32.mrf.mxu2 }
 0x60a   :  { %v1689_v12 = vadd.f32 %v3861_v53, %v1688_v49 }
 0x60c   :  { %v1818_v56 = vadd.f32 %v1817_v44, %v1689_v12 }
 0x610   :  { %v4010_v33 = vpop.f32.mrf.mxu3 }
 0x611   :  { %v1690_v19 = vpop.f32.mrf.mxu1  ;;  %v1822_v32 = vpop.f32.mrf.mxu2 }
 0x612   :  { %v1691_v31 = vadd.f32 %v3861_v53, %v1690_v19 }
 0x614   :  { %v4016_v16 = vadd.f32 %v1819_v6, %v1691_v31 }
 0x615   :  { %1970 = vmatmul.bf16.gmra.mxu3 %v4318_v47  ;;  %v1810_v47 = vadd.f32 %v1809_v46, %v1681_v40  ;;  %v2006_v40 = vmax.f32 %v3993_v4, 0.0  ;;  %v2002_v4 = vmax.f32 %v3957_v50, 0.0 }
 0x618   :  { %v1931_v3 = vpop.f32.mrf.mxu3 }
 0x619   :  { %v1693_v45 = vpop.f32.mrf.mxu1  ;;  %v1824_v52 = vpop.f32.mrf.mxu2  ;;  %v1932_v1 = vadd.f32 %v1931_v3, %v1803_v39 }
 0x61a   :  { %v1694_v36 = vadd.f32 %v3861_v53, %v1693_v45  ;;  %v1798_v45 = vadd.f32 %v3980_v41, %v1669_v61 }
 0x61c   :  { %v4019_v30 = vadd.f32 %v1822_v32, %v1694_v36  ;;  %v1800_v36 = vadd.f32 %v3990_v48, %v1671_v57 }
 0x61e   :  { %v1929_v60 = vadd.f32 %v4010_v33, %v1800_v36  ;;  %v2009_v33 = vmax.f32 %v4005_v28, 0.0  ;;  %v2005_v28 = vmax.f32 %v3985_v63, 0.0 }
 0x620   :  { %v1933_v10 = vpop.f32.mrf.mxu3 }
 0x621   :  { %v1695_v59 = vpop.f32.mrf.mxu1  ;;  %v1827_v9 = vpop.f32.mrf.mxu2 }
 0x622   :  { %v1696_v23 = vadd.f32 %v3861_v53, %v1695_v59 }
 0x624   :  { %v4023_v43 = vadd.f32 %v1824_v52, %v1696_v23  ;;  %v2012_v23 = vmax.f32 %v1932_v1, 0.0  ;;  %v2011_v52 = vmax.f32 %v1929_v60, 0.0 }
 0x625   :  { %1975 = vmatmul.bf16.gmra.mxu3 %v4319_v25  ;;  %v1934_v25 = vadd.f32 %v1933_v10, %v1805_v17  ;;  %v1927_v10 = vadd.f32 %v4008_v54, %v1798_v45  ;;  %v2008_v54 = vmax.f32 %v4003_v37, 0.0  ;;  %v2004_v37 = vmax.f32 %v3974_v8, 0.0 }
 0x627   :  { %v2013_v18 = vmax.f32 %v1934_v25, 0.0  ;;  %v2010_v3 = vmax.f32 %v1927_v10, 0.0 }
 0x628   :  { %v1936_v20 = vpop.f32.mrf.mxu3 }
 0x629   :  { %v1698_v11 = vpop.f32.mrf.mxu1  ;;  %v1937_v34 = vadd.f32 %v1936_v20, %v1808_v13  ;;  %v1829_v46 = vpop.f32.mrf.mxu2 }
 0x62a   :  { %v1699_v55 = vadd.f32 %v3861_v53, %v1698_v11 }
 0x62b   :  { %v2014_v32 = vmax.f32 %v1937_v34, 0.0 }
 0x62c   :  { %v4030_v24 = vadd.f32 %v1827_v9, %v1699_v55  ;;  %v2007_v55 = vmax.f32 %v3998_v22, 0.0  ;;  %v2003_v22 = vmax.f32 %v3963_v58, 0.0 }
 0x630   :  { %v1938_v42 = vpop.f32.mrf.mxu3 }
 0x631   :  { %v1939_v12 = vadd.f32 %v1938_v42, %v1810_v47  ;;  %v1700_v19 = vpop.f32.mrf.mxu1  ;;  %v1832_v41 = vpop.f32.mrf.mxu2 }
 0x632   :  { %v1701_v21 = vadd.f32 %v3861_v53, %v1700_v19 }
 0x633   :  { %v2015_v6 = vmax.f32 %v1939_v12, 0.0 }
 0x634   :  { %v1830_v31 = vadd.f32 %v1829_v46, %v1701_v21 }
 0x635   :  { %1980 = vmatmul.bf16.gmra.mxu3 %v4320_v0 }
 0x638   :  { %v1941_v35 = vpop.f32.mrf.mxu3 }
 0x639   :  { %v1942_v2 = vadd.f32 %v1941_v35, %v1813_v62  ;;  %v1703_v20 = vpop.f32.mrf.mxu1  ;;  %v1834_v15 = vpop.f32.mrf.mxu2 }
 0x63a   :  { %v1704_v59 = vadd.f32 %v3861_v53, %v1703_v20 }
 0x63b   :  { %v2016_v7 = vmax.f32 %v1942_v2, 0.0 }
 0x63c   :  { %v1833_v0 = vadd.f32 %v1832_v41, %v1704_v59 }
 0x640   :  { %v1943_v51 = vpop.f32.mrf.mxu3 }
 0x641   :  { %v1944_v49 = vadd.f32 %v1943_v51, %v1815_v26  ;;  %v1705_v35 = vpop.f32.mrf.mxu1  ;;  %v1837_v26 = vpop.f32.mrf.mxu2 }
 0x642   :  { %v1706_v5 = vadd.f32 %v3861_v53, %v1705_v35 }
 0x643   :  { %v2017_v44 = vmax.f32 %v1944_v49, 0.0 }
 0x644   :  { %v1835_v11 = vadd.f32 %v1834_v15, %v1706_v5  ;;  %v2112_v15 = vld [vmem:[%s4163_s7 + $0x78] sm:$0xff] }
 0x645   :  { %2057 = vmatpush.msra.mxu1 %v2017_v44  ;;  %2117 = vmatpush.msra.mxu3 %v2112_v15 }
 0x647   :  { %2058 = vmatpush.msra.mxu1 %v2016_v7 }
 0x648   :  { %v1946_v29 = vpop.f32.mrf.mxu3 }
 0x649   :  { %v4043_v42 = vadd.f32 %v1946_v29, %v1818_v56  ;;  %2059 = vmatpush.msra.mxu1 %v2015_v6  ;;  %v1708_v62 = vpop.f32.mrf.mxu1  ;;  %v1839_v12 = vpop.f32.mrf.mxu2 }
 0x64a   :  { %v1709_v9 = vadd.f32 %v3861_v53, %v1708_v62 }
 0x64b   :  { %2060 = vmatpush.msra.mxu1 %v2014_v32 }
 0x64c   :  { %v1838_v27 = vadd.f32 %v1837_v26, %v1709_v9  ;;  %v2110_v9 = vld [vmem:[%s4163_s7 + $0x68] sm:$0xff] }
 0x64d   :  { %2061 = vmatpush.msra.mxu1 %v2013_v18 }
 0x64f   :  { %2062 = vmatpush.msra.mxu1 %v2012_v23 }
 0x650   :  { %v1948_v48 = vpop.f32.mrf.mxu3 }
 0x651   :  { %v4049_v56 = vadd.f32 %v1948_v48, %v4016_v16  ;;  %2063 = vmatpush.msra.mxu1 %v2011_v52  ;;  %v1710_v58 = vpop.f32.mrf.mxu1  ;;  %v1842_v61 = vpop.f32.mrf.mxu2 }
 0x653   :  { %2064 = vmatpush.msra.mxu1 %v2010_v3 }
 0x655   :  { %2065 = vmatpush.msra.mxu1 %v2009_v33 }
 0x657   :  { %2066 = vmatpush.msra.mxu1 %v2008_v54 }
 0x658   :  { %v1951_v14 = vpop.f32.mrf.mxu3 }
 0x659   :  { %v4057_v16 = vadd.f32 %v1951_v14, %v4019_v30  ;;  %2067 = vmatpush.msra.mxu1 %v2007_v55  ;;  %v1713_v50 = vpop.f32.mrf.mxu1  ;;  %v1711_v55 = vadd.f32 %v3861_v53, %v1710_v58 }
 0x65a   :  { %v1714_v41 = vadd.f32 %v3861_v53, %v1713_v50 }
 0x65b   :  { %2068 = vmatpush.msra.mxu1 %v2006_v40 }
 0x65c   :  { %v1843_v14 = vadd.f32 %v1842_v61, %v1714_v41  ;;  %v2105_v61 = vld [vmem:[%s4163_s7 + $0x40] sm:$0xff] }
 0x65d   :  { %2069 = vmatpush.msra.mxu1 %v2005_v28 }
 0x65f   :  { %2070 = vmatpush.msra.mxu1 %v2004_v37 }
 0x660   :  { %v1953_v38 = vpop.f32.mrf.mxu3 }
 0x661   :  { %v4065_v30 = vadd.f32 %v1953_v38, %v4023_v43  ;;  %2071 = vmatpush.msra.mxu1 %v2003_v22  ;;  %v1715_v21 = vpop.f32.mrf.mxu1  ;;  %v2035_v22 = vld [vmem:[%s4164_s6 + $0x8] sm:$0xff]  ;;  %v1840_v38 = vadd.f32 %v1839_v12, %v1711_v55 }
 0x662   :  { %v2106_v12 = vld [vmem:[%s4163_s7 + $0x48] sm:$0xff] }
 0x663   :  { %2072 = vmatpush.msra.mxu1 %v2002_v4 }
 0x664   :  { %2073 = vmatmul.f32.vlgmr.msra.gmra.mxu1 %v2035_v22 }
 0x668   :  { %v1956_v63 = vpop.f32.mrf.mxu3 }
 0x669   :  { %v4068_v51 = vadd.f32 %v1956_v63, %v4030_v24  ;;  %v1844_v24 = vpop.f32.mrf.mxu2  ;;  %v1718_v17 = vpop.f32.mrf.mxu1 }
 0x66a   :  { %v1719_v20 = vadd.f32 %v3861_v53, %v1718_v17 }
 0x670   :  { %v1958_v13 = vpop.f32.mrf.mxu3 }
 0x671   :  { %v4070_v8 = vadd.f32 %v1958_v13, %v1830_v31  ;;  %v1847_v34 = vpop.f32.mrf.mxu2  ;;  %v1720_v46 = vpop.f32.mrf.mxu1  ;;  %v2108_v13 = vld [vmem:[%s4163_s7 + $0x58] sm:$0xff] }
 0x672   :  { %v1721_v59 = vadd.f32 %v3861_v53, %v1720_v46  ;;  %v1848_v48 = vadd.f32 %v1847_v34, %v1719_v20  ;;  %v2021_v46 = vmax.f32 %v4065_v30, 0.0  ;;  %v2097_v30 = vld [vmem:[%s4163_s7] sm:$0xff] }
 0x673   :  { %v2023_v34 = vmax.f32 %v4070_v8, 0.0  ;;  %v2099_v8 = vld [vmem:[%s4163_s7 + $0x10] sm:$0xff] }
 0x678   :  { %v1961_v47 = vpop.f32.mrf.mxu3 }
 0x679   :  { %v4072_v2 = vadd.f32 %v1961_v47, %v1833_v0  ;;  %v1849_v31 = vpop.f32.mrf.mxu2  ;;  %v1723_v6 = vpop.f32.mrf.mxu1  ;;  %v1716_v0 = vadd.f32 %v3861_v53, %v1715_v21  ;;  %v2104_v21 = vld [vmem:[%s4163_s7 + $0x38] sm:$0xff] }
 0x67a   :  { %v1724_v32 = vadd.f32 %v3861_v53, %v1723_v6  ;;  %v1850_v3 = vadd.f32 %v1849_v31, %v1721_v59  ;;  %v2020_v31 = vmax.f32 %v4057_v16, 0.0  ;;  %v2018_v6 = vmax.f32 %v4043_v42, 0.0  ;;  %v2036_v16 = vld [vmem:[%s4164_s6 + $0x10] sm:$0xff] }
 0x67b   :  { %v1845_v40 = vadd.f32 %v1844_v24, %v1716_v0  ;;  %v2024_v17 = vmax.f32 %v4072_v2, 0.0  ;;  %v2100_v2 = vld [vmem:[%s4163_s7 + $0x18] sm:$0xff] }
 0x680   :  { %v1963_v49 = vpop.f32.mrf.mxu3 }
 0x681   :  { %v4074_v44 = vadd.f32 %v1963_v49, %v1835_v11  ;;  %v1852_v29 = vpop.f32.mrf.mxu2  ;;  %v1725_v36 = vpop.f32.mrf.mxu1  ;;  %v2111_v11 = vld [vmem:[%s4163_s7 + $0x70] sm:$0xff] }
 0x682   :  { %v1726_v60 = vadd.f32 %v3861_v53, %v1725_v36  ;;  %v1853_v10 = vadd.f32 %v1852_v29, %v1724_v32  ;;  %2118 = vmatpush.msra.mxu3 %v2111_v11  ;;  %v2034_v53 = vld [vmem:[%s4164_s6] sm:$0xff]  ;;  %v2107_v49 = vld [vmem:[%s4163_s7 + $0x50] sm:$0xff] }
 0x683   :  { %2053 = vmatmul.f32.vlgmr.msra.gmra.mxu0 %v2034_v53  ;;  %v2025_v24 = vmax.f32 %v4074_v44, 0.0  ;;  %v2101_v44 = vld [vmem:[%s4163_s7 + $0x20] sm:$0xff] }
 0x684   :  { %2119 = vmatpush.msra.mxu3 %v2110_v9  ;;  %v2713_v32 = vld [vmem:[%s4165_s8] ss:$0 sm:$0xff] }
 0x688   :  { %v1966_v43 = vpop.f32.mrf.mxu3 }
 0x689   :  { %v4076_v19 = vadd.f32 %v1966_v43, %v1838_v27  ;;  %v1854_v18 = vpop.f32.mrf.mxu2  ;;  %v2109_v27 = vld [vmem:[%s4163_s7 + $0x60] sm:$0xff] }
 0x68a   :  { %v1855_v23 = vadd.f32 %v1854_v18, %v1726_v60  ;;  %2120 = vmatpush.msra.mxu3 %v2109_v27 }
 0x68c   :  { %2121 = vmatpush.msra.mxu3 %v2108_v13 }
 0x68e   :  { %2122 = vmatpush.msra.mxu3 %v2107_v49 }
 0x690   :  { %v1968_v57 = vpop.f32.mrf.mxu3  ;;  %2123 = vmatpush.msra.mxu3 %v2106_v12 }
 0x691   :  { %v1969_v47 = vadd.f32 %v1968_v57, %v1840_v38  ;;  %v2026_v57 = vmax.f32 %v4076_v19, 0.0  ;;  %v2102_v19 = vld [vmem:[%s4163_s7 + $0x28] sm:$0xff] }
 0x692   :  { %2124 = vmatpush.msra.mxu3 %v2105_v61 }
 0x693   :  { %v2027_v43 = vmax.f32 %v1969_v47, 0.0 }
 0x694   :  { %2125 = vmatpush.msra.mxu3 %v2104_v21 }
 0x698   :  { %v1971_v39 = vpop.f32.mrf.mxu3 }
 0x699   :  { %v1972_v4 = vadd.f32 %v1971_v39, %v1843_v14  ;;  %v2103_v39 = vld [vmem:[%s4163_s7 + $0x30] sm:$0xff] }
 0x69a   :  { %2126 = vmatpush.msra.mxu3 %v2103_v39 }
 0x69b   :  { %v2028_v50 = vmax.f32 %v1972_v4, 0.0 }
 0x69c   :  { %2127 = vmatpush.msra.mxu3 %v2102_v19 }
 0x69e   :  { %2128 = vmatpush.msra.mxu3 %v2101_v44 }
 0x6a0   :  { %v1973_v7 = vpop.f32.mrf.mxu3  ;;  %2129 = vmatpush.msra.mxu3 %v2100_v2 }
 0x6a1   :  { %v1974_v37 = vadd.f32 %v1973_v7, %v1845_v40  ;;  %v2022_v7 = vmax.f32 %v4068_v51, 0.0  ;;  %v2098_v51 = vld [vmem:[%s4163_s7 + $0x8] sm:$0xff] }
 0x6a2   :  { %2130 = vmatpush.msra.mxu3 %v2099_v8 }
 0x6a3   :  { %v2029_v58 = vmax.f32 %v1974_v37, 0.0 }
 0x6a4   :  { %2131 = vmatpush.msra.mxu3 %v2098_v51 }
 0x6a6   :  { %2132 = vmatpush.msra.mxu3 %v2097_v30 }
 0x6a8   :  { %v1976_v25 = vpop.f32.mrf.mxu3 }
 0x6a9   :  { %v1977_v28 = vadd.f32 %v1976_v25, %v1848_v48  ;;  %v2019_v25 = vmax.f32 %v4049_v56, 0.0 }
 0x6ab   :  { %v2030_v63 = vmax.f32 %v1977_v28, 0.0 }
 0x6b0   :  { %v1978_v45 = vpop.f32.mrf.mxu3 }
 0x6b1   :  { %v1979_v5 = vadd.f32 %v1978_v45, %v1850_v3 }
 0x6b3   :  { %v2031_v26 = vmax.f32 %v1979_v5, 0.0 }
 0x6b8   :  { %v1981_v1 = vpop.f32.mrf.mxu3 }
 0x6b9   :  { %v1982_v33 = vadd.f32 %v1981_v1, %v1853_v10 }
 0x6bb   :  { %v2032_v62 = vmax.f32 %v1982_v33, 0.0 }
 0x6c0   :  { %v1983_v52 = vpop.f32.mrf.mxu3 }
 0x6c1   :  { %v1984_v35 = vadd.f32 %v1983_v52, %v1855_v23 }
 0x6c3   :  { %v2033_v54 = vmax.f32 %v1984_v35, 0.0 }
 0x6c5   :  { %2077 = vmatpush.msra.mxu2 %v2033_v54 }
 0x6c7   :  { %2078 = vmatpush.msra.mxu2 %v2032_v62 }
 0x6c9   :  { %2079 = vmatpush.msra.mxu2 %v2031_v26 }
 0x6cb   :  { %2080 = vmatpush.msra.mxu2 %v2030_v63 }
 0x6cd   :  { %2081 = vmatpush.msra.mxu2 %v2029_v58 }
 0x6cf   :  { %2082 = vmatpush.msra.mxu2 %v2028_v50 }
 0x6d1   :  { %2083 = vmatpush.msra.mxu2 %v2027_v43 }
 0x6d3   :  { %2084 = vmatpush.msra.mxu2 %v2026_v57 }
 0x6d5   :  { %2085 = vmatpush.msra.mxu2 %v2025_v24 }
 0x6d7   :  { %2086 = vmatpush.msra.mxu2 %v2024_v17 }
 0x6d9   :  { %2087 = vmatpush.msra.mxu2 %v2023_v34 }
 0x6db   :  { %2088 = vmatpush.msra.mxu2 %v2022_v7 }
 0x6dd   :  { %2089 = vmatpush.msra.mxu2 %v2021_v46 }
 0x6df   :  { %2090 = vmatpush.msra.mxu2 %v2020_v31 }
 0x6e1   :  { %2091 = vmatpush.msra.mxu2 %v2019_v25  ;;  %v2074_v29 = vpop.f32.mrf.mxu1 }
 0x6e3   :  { %2092 = vmatpush.msra.mxu2 %v2018_v6 }
 0x6e4   :  { %2093 = vmatmul.f32.vlgmr.msra.gmra.mxu2 %v2036_v16 }
 0x700   :  { %v2054_v45 = vpop.f32.mrf.mxu0 }
 0x701   :  { %v2075_v36 = vadd.f32 %v2074_v29, %v2054_v45 }
 0x767   :  { %v2094_v56 = vpop.f32.mrf.mxu2 }
 0x768   :  { %v2095_v1 = vadd.f32 %v2094_v56, %v2075_v36 }
 0x76a   :  { %2133 = vmatmul.f32.vlgmr.msra.gmra.mxu3 %v2095_v1 }
 0x7ed   :  { %v2134_v60 = vpop.f32.mrf.mxu3 }
 0x7ee   :  { %v2135_v42 = vadd.f32 %v2713_v32, %v2134_v60 }
 0x7f0   :  { %v2605_v18 = vmul.f32 -1.442695, %v2135_v42 }
 0x7f2   :  { %2714 = vpow2.f32 %v2605_v18 }
 0x7f8   :  { %v2715_v20 = vpop.eup %2714 }
 0x7f9   :  { %v2140_v59 = vadd.f32 1.0, %v2715_v20 }
 0x7fb   :  { %2716 = vrcp.f32 %v2140_v59  ;;  %v2152_v0 = vand.u32 2147483648, %v2140_v59  ;;  %v2150_v48 = vand.u32 2147483647, %v2140_v59  ;;  %vm2146_vm2 = vweird.f32 %v2140_v59 }
 0x7fd   :  { %v2153_v33 = vor.u32 1.1754944e-38, %v2152_v0  ;;  %vm2151_vm4 = vcmp.eq.f32.partialorder %v2150_v48, 8.507059e+37 }
 0x801   :  { %v2717_v10 = vpop.eup %2716 }
 0x802   :  { %v2142_v23 = vmul.f32 %v2717_v10, %v2140_v59  ;;  %vm2147_vm1 = vweird.f32 %v2717_v10 }
 0x803   :  { %vm2148_vm3 = vmor %vm2146_vm2, %vm2147_vm1 }
 0x804   :  { %v2143_v41 = vsub.f32 1.0, %v2142_v23 }
 0x806   :  { %v2144_v52 = vmul.f32 %v2717_v10, %v2143_v41 }
 0x808   :  { %v2145_v3 = vadd.f32 %v2717_v10, %v2144_v52 }
 0x80a   :  { %v2149_v35 = vsel %vm2148_vm3, %v2717_v10, %v2145_v3 }
 0x80b   :  { %v2154_v5 = vsel %vm2151_vm4, %v2153_v33, %v2149_v35 }
 0x80c   :  { %2156 = vst [vmem:[%s4166_s9] sm:$0xff] %v2154_v5 }

</bundles_post_ra>
